<compile_context>
chip_gen: v7x
topology: tpu7x:2x2x1
jax: 0.10.0
libtpu: 0.0.40
codegen_flags: <defaults>
</compile_context>

<pallas_src>
import math
import functools

import jax
import jax.numpy as jnp
from jax.experimental import pallas as pl
from jax.experimental.pallas import tpu as pltpu

# ----------------------------------------------------------------------------
# Filter constants (exactly what Canny.__init__ builds).
# ----------------------------------------------------------------------------
# scipy.signal.gaussian(5, std=1.0): exp(-0.5*n^2), n in [-2..2]  (UNnormalized)
_G0 = math.exp(-2.0)     # taps at +-2
_G1 = math.exp(-0.5)     # taps at +-1
_G2 = 1.0                # center tap

_TAN22_5 = 0.41421356237309503   # tan(22.5 deg)
_TAN67_5 = 2.414213562373095     # tan(67.5 deg)

_HALO = 3   # 2 rows for the 5-tap Gaussian + 1 row for the 3x3 Sobel


def _round_up(x, m):
    return (x + m - 1) // m * m


# ----------------------------------------------------------------------------
# Pass 1: Gaussian blur + Sobel + magnitude / orientation / early threshold.
# One row tile of one batch element per grid step.
# ----------------------------------------------------------------------------
def _blur_grad_kernel(img_hbm, blurred_ref, gm_ref, go_ref, early_ref,
                      imgbuf, sems, *, threshold, H, W, TH, Wp, rows_per_img):
    ROWS = TH + 2 * _HALO
    t = pl.program_id(0)
    b = pl.program_id(1)
    f32 = jnp.float32

    def chan_copy(c):
        # img_hbm is the zero-padded image flattened to (B*3*rows_per_img, Wp);
        # channel c of batch b starts at row (b*3 + c) * rows_per_img.
        src_row = (b * 3 + c) * rows_per_img + t * TH
        return pltpu.make_async_copy(img_hbm.at[pl.ds(src_row, ROWS)],
                                     imgbuf.at[c], sems.at[c])

    # One-ahead channel prefetch: only channel 0's DMA is exposed per step.
    chan_copy(0).start()
    chan_copy(1).start()

    # Validity masks in global coordinates (hoisted out of the channel loop).
    # Local row r of the "blurred" intermediate maps to global row t*TH - 1 + r.
    row_g = jax.lax.broadcasted_iota(jnp.int32, (TH + 2, Wp), 0) + (t * TH - 1)
    col_g = jax.lax.broadcasted_iota(jnp.int32, (TH + 2, Wp), 1)
    bl_valid = (row_g >= 0) & (row_g < H) & (col_g < W)
    out_valid = bl_valid[1:TH + 1]

    gm = jnp.zeros((TH, Wp), f32)
    gxs = jnp.zeros((TH, Wp), f32)
    gys = jnp.zeros((TH, Wp), f32)

    for c in range(3):
        chan_copy(c).wait()
        if c == 0:
            chan_copy(2).start()
        x = imgbuf[c]                                    # (ROWS, Wp)

        # --- horizontal 5-tap Gaussian via lane rolls (XLU) -----------------
        # The wrapper guarantees columns [W, Wp) are zero and Wp >= W + 2, so
        # the circular wrap only ever brings in zeros for the columns we keep.
        xm1 = pltpu.roll(x, 1, axis=1)                   # x[:, j-1]
        xp1 = pltpu.roll(x, Wp - 1, axis=1)              # x[:, j+1]
        xm2 = pltpu.roll(x, 2, axis=1)                   # x[:, j-2]
        xp2 = pltpu.roll(x, Wp - 2, axis=1)              # x[:, j+2]
        bh = _G2 * x + _G1 * (xm1 + xp1) + _G0 * (xm2 + xp2)

        # --- vertical 5-tap Gaussian via sublane slices ----------------------
        # bl local row r (global t*TH - 1 + r) = sum_i g[i] * bh[r + i].
        bl = (_G2 * bh[2:TH + 4]
              + _G1 * (bh[1:TH + 3] + bh[3:TH + 5])
              + _G0 * (bh[0:TH + 2] + bh[4:TH + 6]))

        blurred_ref[0, c, :, :] = bl[1:TH + 1]           # interior rows only

        # Sobel sees the *blurred* image zero-padded outside [0,H)x[0,W).
        blm = jnp.where(bl_valid, bl, 0.0)

        # --- separable Sobel: horizontal part via rolls, vertical via slices -
        left = pltpu.roll(blm, 1, axis=1)                # blm[:, j-1]
        right = pltpu.roll(blm, Wp - 1, axis=1)          # blm[:, j+1]
        h_diff = left - right                            # for grad_x
        h_sum = left + 2.0 * blm + right                 # for grad_y
        gx = h_diff[0:TH] + 2.0 * h_diff[1:TH + 1] + h_diff[2:TH + 2]
        gy = h_sum[0:TH] - h_sum[2:TH + 2]

        gm = gm + jnp.sqrt(gx * gx + gy * gy)
        gxs = gxs + gx
        gys = gys + gy

    # --- octant binning (replaces atan2 * 180/3.14159 + 180, round to 45) ----
    # Differences vs. the torch reference only on a measure-zero set of
    # bin-boundary angles (reference uses the truncated constant 3.14159 and
    # round-half-to-even; same class of caveat as the old atan2 polynomial).
    ax = jnp.abs(gxs)
    ay = jnp.abs(gys)
    m = jnp.where(ay > _TAN67_5 * ax, 2.0,
                  jnp.where(ay <= _TAN22_5 * ax, 0.0, 1.0))
    u = jnp.where(gxs >= 0.0, m, 4.0 - m)
    k = jnp.where(gys >= 0.0, u, -u) + 4.0               # k in {0, ..., 8}

    # grad_mag must be exactly zero outside the valid image so pass 2's
    # neighbour reads reproduce the reference's zero padding.
    gm_m = jnp.where(out_valid, gm, 0.0)
    gm_ref[0, :, :] = gm_m
    go_ref[0, :, :] = 45.0 * k
    early_ref[0, :, :] = jnp.where(gm_m < threshold, 0.0, gm_m)


# ----------------------------------------------------------------------------
# Pass 2: non-max suppression + threshold.  Every batch element selects from
# batch 0's directional differences (reference flat-index gather semantics).
# ----------------------------------------------------------------------------
def _nms_kernel(gm_ref, go_ref, gm_hbm, thin_ref, thr_ref, gm0pad, sems,
                *, threshold, TH, Wp, n_tiles):
    t = pl.program_id(0)
    b = pl.program_id(1)
    f32 = jnp.float32

    first_b = b == 0
    has_top = t > 0
    has_bot = t < n_tiles - 1

    # gm0pad (TH+2, Wp) holds batch-0 grad_mag with a 1-row halo.  It only
    # depends on t, and the batch axis is the inner "arbitrary" grid axis, so
    # it is refreshed once per row tile (b == 0) and reused for b > 0.
    @pl.when(first_b)
    def _():
        cp = pltpu.make_async_copy(gm_hbm.at[pl.ds(t * TH, TH)],
                                   gm0pad.at[pl.ds(1, TH)], sems.at[0])
        cp.start()
        cp.wait()

    @pl.when(first_b & has_top)
    def _():
        cp = pltpu.make_async_copy(gm_hbm.at[pl.ds(t * TH - 1, 1)],
                                   gm0pad.at[pl.ds(0, 1)], sems.at[1])
        cp.start()
        cp.wait()

    @pl.when(first_b & jnp.logical_not(has_top))
    def _():
        gm0pad[0:1, :] = jnp.zeros((1, Wp), f32)

    @pl.when(first_b & has_bot)
    def _():
        cp = pltpu.make_async_copy(gm_hbm.at[pl.ds(t * TH + TH, 1)],
                                   gm0pad.at[pl.ds(TH + 1, 1)], sems.at[2])
        cp.start()
        cp.wait()

    @pl.when(first_b & jnp.logical_not(has_bot))
    def _():
        gm0pad[TH + 1:TH + 2, :] = jnp.zeros((1, Wp), f32)

    gm = gm_ref[0]                    # this batch's gradient magnitude tile
    orient = go_ref[0]                # exact multiples of 45 in [0, 360]

    # 45*kpos = orient % 360 ; 45*kneg = (orient + 180) % 360  (all exact).
    opos = jnp.where(orient >= 360.0, orient - 360.0, orient)
    oneg = jnp.where(orient >= 180.0, orient - 180.0, orient + 180.0)

    ctr = gm0pad[1:TH + 1, :]
    up = gm0pad[0:TH, :]
    dn = gm0pad[2:TH + 2, :]

    def shr(a, d):                    # a[:, j + d] (wrap lands in zero cols)
        return pltpu.roll(a, (-d) % Wp, axis=1)

    # Neighbour offsets of the 8 directional filters, in direction order.
    nbrs = (shr(ctr, 1), shr(dn, 1), dn, shr(dn, -1),
            shr(ctr, -1), shr(up, -1), up, shr(up, 1))

    pos = jnp.zeros((TH, Wp), f32)
    neg = jnp.zeros((TH, Wp), f32)
    for d, nbr in enumerate(nbrs):
        afd = ctr - nbr               # directional filter = center - neighbour
        deg = 45.0 * d
        pos = jnp.where(opos == deg, afd, pos)
        neg = jnp.where(oneg == deg, afd, neg)

    thin = jnp.where(jnp.minimum(pos, neg) > 0.0, gm, 0.0)
    thin_ref[0, :, :] = thin
    thr_ref[0, :, :] = jnp.where(thin < threshold, 0.0, thin)


# ----------------------------------------------------------------------------
# Wrapper
# ----------------------------------------------------------------------------
def canny_forward(img, threshold=10.0):
    """img: float [B, C>=3, H, W] (NCHW, like the PyTorch module)."""
    B, C, H, W = img.shape
    assert C >= 3
    f32 = jnp.float32
    thr = float(threshold)

    # Lane-dense width: multiple of 128 and >= W+2 so the roll wrap-around of
    # the +-2 Gaussian taps reads zero-padded columns.
    Wp = _round_up(W + 2, 128)

    # Per-generation tile sizing from the physical VMEM (v7x: 64 MiB/TC,
    # v5e/v6e: 128 MiB), with a conservative fallback.
    try:
        phys_vmem = int(pltpu.get_tpu_info().vmem_capacity_bytes)
    except Exception:
        phys_vmem = 64 << 20
    # Rough per-row f32 planes: 3 halo'd input planes + 2x double-buffered
    # 6 output planes + ~20 live temporaries.
    planes = 36
    budget = max(20 << 20, min(int(phys_vmem * 0.65), 80 << 20))
    TH = budget // (planes * Wp * 4)
    TH = max(8, (TH // 8) * 8)
    TH = min(TH, _round_up(H, 8), 512)
    Hp = _round_up(H, TH)
    n_tiles = Hp // TH
    rows_per_img = Hp + 2 * _HALO

    vmem_limit = int(min(max(int(planes * TH * Wp * 4 * 1.25), 32 << 20),
                         int(phys_vmem * 0.9)))

    # Zero-pad rows (3-row halo + tile alignment) and columns (lane density).
    # This reproduces the Conv2d zero padding and makes every halo DMA a
    # fixed-size in-bounds window.
    img_p = jnp.pad(img[:, :3].astype(f32),
                    ((0, 0), (0, 0), (_HALO, (Hp - H) + _HALO), (0, Wp - W)))
    img_lin = img_p.reshape(B * 3 * rows_per_img, Wp)

    plane_spec = pl.BlockSpec((1, TH, Wp), lambda t, b: (b, t, 0))

    # ---- pass 1: blur + gradients ------------------------------------------
    blurred, grad_mag, grad_orient, early = pl.pallas_call(
        functools.partial(_blur_grad_kernel, threshold=thr, H=H, W=W,
                          TH=TH, Wp=Wp, rows_per_img=rows_per_img),
        out_shape=(jax.ShapeDtypeStruct((B, 3, Hp, Wp), f32),
                   jax.ShapeDtypeStruct((B, Hp, Wp), f32),
                   jax.ShapeDtypeStruct((B, Hp, Wp), f32),
                   jax.ShapeDtypeStruct((B, Hp, Wp), f32)),
        grid=(n_tiles, B),
        in_specs=[pl.BlockSpec(memory_space=pl.ANY)],
        out_specs=(pl.BlockSpec((1, 3, TH, Wp), lambda t, b: (b, 0, t, 0)),
                   plane_spec, plane_spec, plane_spec),
        scratch_shapes=[pltpu.VMEM((3, TH + 2 * _HALO, Wp), f32),
                        pltpu.SemaphoreType.DMA((3,))],
        compiler_params=pltpu.CompilerParams(
            dimension_semantics=("parallel", "parallel"),
            vmem_limit_bytes=vmem_limit),
    )(img_lin)

    # Batch-0 rows of grad_mag as a flat (B*Hp, Wp) view for the NMS halo DMA.
    gm_lin = grad_mag.reshape(B * Hp, Wp)

    # ---- pass 2: non-max suppression + threshold ---------------------------
    thin, thresholded = pl.pallas_call(
        functools.partial(_nms_kernel, threshold=thr, TH=TH, Wp=Wp,
                          n_tiles=n_tiles),
        out_shape=(jax.ShapeDtypeStruct((B, Hp, Wp), f32),
                   jax.ShapeDtypeStruct((B, Hp, Wp), f32)),
        grid=(n_tiles, B),
        in_specs=[plane_spec, plane_spec,
                  pl.BlockSpec(memory_space=pl.ANY)],
        out_specs=(plane_spec, plane_spec),
        scratch_shapes=[pltpu.VMEM((TH + 2, Wp), f32),
                        pltpu.SemaphoreType.DMA((3,))],
        compiler_params=pltpu.CompilerParams(
            dimension_semantics=("parallel", "arbitrary"),
            vmem_limit_bytes=vmem_limit),
    )(grad_mag, grad_orient, gm_lin)

    # Crop back to the original extent (no-op when already aligned).
    blurred = blurred[:, :, :H, :W]
    grad_mag = grad_mag[:, :H, :W]
    grad_orient = grad_orient[:, :H, :W]
    early = early[:, :H, :W]
    thin = thin[:, :H, :W]
    thresholded = thresholded[:, :H, :W]

    # torch.stack([torch.squeeze(stack([r,g,b],1))]) -> squeeze-all + leading 1
    # (bare squeeze kept on purpose to mirror torch.squeeze's B==1 quirk).
    blurred_img = jnp.squeeze(blurred)[None, ...]
    return (blurred_img,
            grad_mag[:, None],
            grad_orient[:, None],
            thin[:, None],
            thresholded[:, None],
            early[:, None])


if __name__ == "__main__":
    key = jax.random.PRNGKey(0)
    B, C, H, W = 2, 3, 16, 16
    img = jax.random.uniform(key, (B, C, H, W), dtype=jnp.float32) * 255.0

    outs = jax.block_until_ready(canny_forward(img, threshold=10.0))
    blurred_img, grad_mag, grad_orient, thin, thresholded, early = outs

    assert blurred_img.shape == (1, B, 3, H, W)
    for o in (grad_mag, grad_orient, thin, thresholded, early):
        assert o.shape == (B, 1, H, W)
        assert bool(jnp.all(jnp.isfinite(o)))
    assert bool(jnp.all(jnp.isfinite(blurred_img)))

    # Internal-consistency invariants of the reference forward pass.
    assert bool(jnp.array_equal(jnp.where(grad_mag < 10.0, 0.0, grad_mag), early))
    assert bool(jnp.array_equal(jnp.where(thin < 10.0, 0.0, thin), thresholded))
    assert bool(jnp.all(grad_orient % 45.0 == 0.0))
    assert bool(jnp.all((grad_orient >= 0.0) & (grad_orient <= 360.0)))

    print("KERNEL_OK")
</pallas_src>

<mosaic_0001>
module attributes {stable_mosaic.version = 11 : i64} {
  func.func @_blur_grad_kernel(%arg0: i32, %arg1: i32, %arg2: memref<132x128xf32, #tpu.memory_space<any>>, %arg3: memref<1x3x16x128xf32, #tpu.memory_space<vmem>>, %arg4: memref<1x16x128xf32, #tpu.memory_space<vmem>>, %arg5: memref<1x16x128xf32, #tpu.memory_space<vmem>>, %arg6: memref<1x16x128xf32, #tpu.memory_space<vmem>>, %arg7: memref<3x22x128xf32, #tpu.memory_space<vmem>>, %arg8: memref<3x!tpu.dma_semaphore, #tpu.memory_space<semaphore_mem>>) attributes {dimension_semantics = [#tpu.dimension_semantics<parallel>, #tpu.dimension_semantics<parallel>], iteration_bounds = array<i64: 1, 2>, scalar_prefetch = 0 : i64, scratch_operands = 2 : i64, tpu.core_type = #tpu.core_type<tc>, window_params = [{}, {transform_indices = @transform_1, window_bounds = array<i64: 1, 3, 16, 128>}, {transform_indices = @transform_2, window_bounds = array<i64: 1, 16, 128>}, {transform_indices = @transform_3, window_bounds = array<i64: 1, 16, 128>}, {transform_indices = @transform_4, window_bounds = array<i64: 1, 16, 128>}]} {
    %c3_i32 = arith.constant 3 : i32
    %0 = arith.muli %arg1, %c3_i32 : i32
    %c0_i32 = arith.constant 0 : i32
    %1 = arith.addi %0, %c0_i32 : i32
    %c22_i32 = arith.constant 22 : i32
    %2 = arith.muli %1, %c22_i32 : i32
    %c16_i32 = arith.constant 16 : i32
    %3 = arith.muli %arg0, %c16_i32 : i32
    %4 = arith.addi %2, %3 : i32
    %c0_i32_0 = arith.constant 0 : i32
    %c0_i32_1 = arith.constant 0 : i32
    %c0_i32_2 = arith.constant 0 : i32
    %5 = tpu.memref_slice %arg2[%4, %c0_i32_2] : memref<132x128xf32, #tpu.memory_space<any>> -> memref<22x128xf32, #tpu.memory_space<any>>
    %c0_i32_3 = arith.constant 0 : i32
    %c0_i32_4 = arith.constant 0 : i32
    %6 = tpu.memref_slice %arg7[%c0_i32_0, %c0_i32_3, %c0_i32_4] : memref<3x22x128xf32, #tpu.memory_space<vmem>> -> memref<1x22x128xf32, #tpu.memory_space<vmem>>
    %7 = tpu.memref_squeeze %6 : memref<1x22x128xf32, #tpu.memory_space<vmem>> -> memref<22x128xf32, #tpu.memory_space<vmem>>
    %8 = tpu.memref_slice %arg8[%c0_i32_1] : memref<3x!tpu.dma_semaphore, #tpu.memory_space<semaphore_mem>> -> memref<1x!tpu.dma_semaphore, #tpu.memory_space<semaphore_mem>>
    %9 = tpu.memref_squeeze %8 : memref<1x!tpu.dma_semaphore, #tpu.memory_space<semaphore_mem>> -> memref<!tpu.dma_semaphore, #tpu.memory_space<semaphore_mem>>
    tpu.enqueue_dma source(%5 : memref<22x128xf32, #tpu.memory_space<any>>) target(%7 : memref<22x128xf32, #tpu.memory_space<vmem>>) target_semaphore(%9 : memref<!tpu.dma_semaphore, #tpu.memory_space<semaphore_mem>>)
    %c3_i32_5 = arith.constant 3 : i32
    %10 = arith.muli %arg1, %c3_i32_5 : i32
    %c1_i32 = arith.constant 1 : i32
    %11 = arith.addi %10, %c1_i32 : i32
    %c22_i32_6 = arith.constant 22 : i32
    %12 = arith.muli %11, %c22_i32_6 : i32
    %c16_i32_7 = arith.constant 16 : i32
    %13 = arith.muli %arg0, %c16_i32_7 : i32
    %14 = arith.addi %12, %13 : i32
    %c1_i32_8 = arith.constant 1 : i32
    %c1_i32_9 = arith.constant 1 : i32
    %c0_i32_10 = arith.constant 0 : i32
    %15 = tpu.memref_slice %arg2[%14, %c0_i32_10] : memref<132x128xf32, #tpu.memory_space<any>> -> memref<22x128xf32, #tpu.memory_space<any>>
    %c0_i32_11 = arith.constant 0 : i32
    %c0_i32_12 = arith.constant 0 : i32
    %16 = tpu.memref_slice %arg7[%c1_i32_8, %c0_i32_11, %c0_i32_12] : memref<3x22x128xf32, #tpu.memory_space<vmem>> -> memref<1x22x128xf32, #tpu.memory_space<vmem>>
    %17 = tpu.memref_squeeze %16 : memref<1x22x128xf32, #tpu.memory_space<vmem>> -> memref<22x128xf32, #tpu.memory_space<vmem>>
    %18 = tpu.memref_slice %arg8[%c1_i32_9] : memref<3x!tpu.dma_semaphore, #tpu.memory_space<semaphore_mem>> -> memref<1x!tpu.dma_semaphore, #tpu.memory_space<semaphore_mem>>
    %19 = tpu.memref_squeeze %18 : memref<1x!tpu.dma_semaphore, #tpu.memory_space<semaphore_mem>> -> memref<!tpu.dma_semaphore, #tpu.memory_space<semaphore_mem>>
    tpu.enqueue_dma source(%15 : memref<22x128xf32, #tpu.memory_space<any>>) target(%17 : memref<22x128xf32, #tpu.memory_space<vmem>>) target_semaphore(%19 : memref<!tpu.dma_semaphore, #tpu.memory_space<semaphore_mem>>)
    %20 = tpu.iota {dimensions = array<i32: 0>} : vector<18x128xi32>
    %c16_i32_13 = arith.constant 16 : i32
    %21 = arith.muli %arg0, %c16_i32_13 : i32
    %c1_i32_14 = arith.constant 1 : i32
    %22 = arith.subi %21, %c1_i32_14 : i32
    %23 = vector.broadcast %22 : i32 to vector<18x128xi32>
    %24 = arith.addi %20, %23 : vector<18x128xi32>
    %25 = tpu.iota {dimensions = array<i32: 1>} : vector<18x128xi32>
    %c0_i32_15 = arith.constant 0 : i32
    %26 = vector.broadcast %c0_i32_15 : i32 to vector<18x128xi32>
    %27 = arith.cmpi sge, %24, %26 : vector<18x128xi32>
    %c16_i32_16 = arith.constant 16 : i32
    %28 = vector.broadcast %c16_i32_16 : i32 to vector<18x128xi32>
    %29 = arith.cmpi slt, %24, %28 : vector<18x128xi32>
    %30 = arith.andi %27, %29 : vector<18x128xi1>
    %c16_i32_17 = arith.constant 16 : i32
    %31 = vector.broadcast %c16_i32_17 : i32 to vector<18x128xi32>
    %32 = arith.cmpi slt, %25, %31 : vector<18x128xi32>
    %33 = arith.andi %30, %32 : vector<18x128xi1>
    %34 = vector.extract_strided_slice %33 {offsets = [1, 0], sizes = [16, 128], strides = [1, 1]} : vector<18x128xi1> to vector<16x128xi1>
    %cst = arith.constant 0.000000e+00 : f32
    %35 = vector.broadcast %cst : f32 to vector<16x128xf32>
    %cst_18 = arith.constant 0.000000e+00 : f32
    %36 = vector.broadcast %cst_18 : f32 to vector<16x128xf32>
    %cst_19 = arith.constant 0.000000e+00 : f32
    %37 = vector.broadcast %cst_19 : f32 to vector<16x128xf32>
    %c3_i32_20 = arith.constant 3 : i32
    %38 = arith.muli %arg1, %c3_i32_20 : i32
    %c0_i32_21 = arith.constant 0 : i32
    %39 = arith.addi %38, %c0_i32_21 : i32
    %c22_i32_22 = arith.constant 22 : i32
    %40 = arith.muli %39, %c22_i32_22 : i32
    %c16_i32_23 = arith.constant 16 : i32
    %41 = arith.muli %arg0, %c16_i32_23 : i32
    %42 = arith.addi %40, %41 : i32
    %c0_i32_24 = arith.constant 0 : i32
    %c0_i32_25 = arith.constant 0 : i32
    %c0_i32_26 = arith.constant 0 : i32
    %43 = tpu.memref_slice %arg2[%42, %c0_i32_26] : memref<132x128xf32, #tpu.memory_space<any>> -> memref<22x128xf32, #tpu.memory_space<any>>
    %c0_i32_27 = arith.constant 0 : i32
    %c0_i32_28 = arith.constant 0 : i32
    %44 = tpu.memref_slice %arg7[%c0_i32_24, %c0_i32_27, %c0_i32_28] : memref<3x22x128xf32, #tpu.memory_space<vmem>> -> memref<1x22x128xf32, #tpu.memory_space<vmem>>
    %45 = tpu.memref_squeeze %44 : memref<1x22x128xf32, #tpu.memory_space<vmem>> -> memref<22x128xf32, #tpu.memory_space<vmem>>
    %46 = tpu.memref_slice %arg8[%c0_i32_25] : memref<3x!tpu.dma_semaphore, #tpu.memory_space<semaphore_mem>> -> memref<1x!tpu.dma_semaphore, #tpu.memory_space<semaphore_mem>>
    %47 = tpu.memref_squeeze %46 : memref<1x!tpu.dma_semaphore, #tpu.memory_space<semaphore_mem>> -> memref<!tpu.dma_semaphore, #tpu.memory_space<semaphore_mem>>
    tpu.wait_dma2 semaphore(%47 : memref<!tpu.dma_semaphore, #tpu.memory_space<semaphore_mem>>) src(%43 : memref<22x128xf32, #tpu.memory_space<any>>) dst(%45 : memref<22x128xf32, #tpu.memory_space<vmem>>)
    %c3_i32_29 = arith.constant 3 : i32
    %48 = arith.muli %arg1, %c3_i32_29 : i32
    %c2_i32 = arith.constant 2 : i32
    %49 = arith.addi %48, %c2_i32 : i32
    %c22_i32_30 = arith.constant 22 : i32
    %50 = arith.muli %49, %c22_i32_30 : i32
    %c16_i32_31 = arith.constant 16 : i32
    %51 = arith.muli %arg0, %c16_i32_31 : i32
    %52 = arith.addi %50, %51 : i32
    %c2_i32_32 = arith.constant 2 : i32
    %c2_i32_33 = arith.constant 2 : i32
    %c0_i32_34 = arith.constant 0 : i32
    %53 = tpu.memref_slice %arg2[%52, %c0_i32_34] : memref<132x128xf32, #tpu.memory_space<any>> -> memref<22x128xf32, #tpu.memory_space<any>>
    %c0_i32_35 = arith.constant 0 : i32
    %c0_i32_36 = arith.constant 0 : i32
    %54 = tpu.memref_slice %arg7[%c2_i32_32, %c0_i32_35, %c0_i32_36] : memref<3x22x128xf32, #tpu.memory_space<vmem>> -> memref<1x22x128xf32, #tpu.memory_space<vmem>>
    %55 = tpu.memref_squeeze %54 : memref<1x22x128xf32, #tpu.memory_space<vmem>> -> memref<22x128xf32, #tpu.memory_space<vmem>>
    %56 = tpu.memref_slice %arg8[%c2_i32_33] : memref<3x!tpu.dma_semaphore, #tpu.memory_space<semaphore_mem>> -> memref<1x!tpu.dma_semaphore, #tpu.memory_space<semaphore_mem>>
    %57 = tpu.memref_squeeze %56 : memref<1x!tpu.dma_semaphore, #tpu.memory_space<semaphore_mem>> -> memref<!tpu.dma_semaphore, #tpu.memory_space<semaphore_mem>>
    tpu.enqueue_dma source(%53 : memref<22x128xf32, #tpu.memory_space<any>>) target(%55 : memref<22x128xf32, #tpu.memory_space<vmem>>) target_semaphore(%57 : memref<!tpu.dma_semaphore, #tpu.memory_space<semaphore_mem>>)
    %c0 = arith.constant 0 : index
    %c0_37 = arith.constant 0 : index
    %c0_38 = arith.constant 0 : index
    %58 = vector.load %arg7[%c0, %c0_37, %c0_38] : memref<3x22x128xf32, #tpu.memory_space<vmem>>, vector<1x22x128xf32>
    %59 = vector.shape_cast %58 : vector<1x22x128xf32> to vector<22x128xf32>
    %c1_i32_39 = arith.constant 1 : i32
    %60 = tpu.dynamic_rotate %59 by %c1_i32_39 dim 1 : vector<22x128xf32>, i32 -> vector<22x128xf32>
    %c127_i32 = arith.constant 127 : i32
    %61 = tpu.dynamic_rotate %59 by %c127_i32 dim 1 : vector<22x128xf32>, i32 -> vector<22x128xf32>
    %c2_i32_40 = arith.constant 2 : i32
    %62 = tpu.dynamic_rotate %59 by %c2_i32_40 dim 1 : vector<22x128xf32>, i32 -> vector<22x128xf32>
    %c126_i32 = arith.constant 126 : i32
    %63 = tpu.dynamic_rotate %59 by %c126_i32 dim 1 : vector<22x128xf32>, i32 -> vector<22x128xf32>
    %cst_41 = arith.constant 1.000000e+00 : f32
    %64 = vector.broadcast %cst_41 : f32 to vector<22x128xf32>
    %65 = arith.mulf %64, %59 : vector<22x128xf32>
    %66 = arith.addf %60, %61 : vector<22x128xf32>
    %cst_42 = arith.constant 0.606530666 : f32
    %67 = vector.broadcast %cst_42 : f32 to vector<22x128xf32>
    %68 = arith.mulf %67, %66 : vector<22x128xf32>
    %69 = arith.addf %65, %68 : vector<22x128xf32>
    %70 = arith.addf %62, %63 : vector<22x128xf32>
    %cst_43 = arith.constant 0.135335281 : f32
    %71 = vector.broadcast %cst_43 : f32 to vector<22x128xf32>
    %72 = arith.mulf %71, %70 : vector<22x128xf32>
    %73 = arith.addf %69, %72 : vector<22x128xf32>
    %74 = vector.extract_strided_slice %73 {offsets = [2, 0], sizes = [18, 128], strides = [1, 1]} : vector<22x128xf32> to vector<18x128xf32>
    %cst_44 = arith.constant 1.000000e+00 : f32
    %75 = vector.broadcast %cst_44 : f32 to vector<18x128xf32>
    %76 = arith.mulf %75, %74 : vector<18x128xf32>
    %77 = vector.extract_strided_slice %73 {offsets = [1, 0], sizes = [18, 128], strides = [1, 1]} : vector<22x128xf32> to vector<18x128xf32>
    %78 = vector.extract_strided_slice %73 {offsets = [3, 0], sizes = [18, 128], strides = [1, 1]} : vector<22x128xf32> to vector<18x128xf32>
    %79 = arith.addf %77, %78 : vector<18x128xf32>
    %cst_45 = arith.constant 0.606530666 : f32
    %80 = vector.broadcast %cst_45 : f32 to vector<18x128xf32>
    %81 = arith.mulf %80, %79 : vector<18x128xf32>
    %82 = arith.addf %76, %81 : vector<18x128xf32>
    %83 = vector.extract_strided_slice %73 {offsets = [0, 0], sizes = [18, 128], strides = [1, 1]} : vector<22x128xf32> to vector<18x128xf32>
    %84 = vector.extract_strided_slice %73 {offsets = [4, 0], sizes = [18, 128], strides = [1, 1]} : vector<22x128xf32> to vector<18x128xf32>
    %85 = arith.addf %83, %84 : vector<18x128xf32>
    %cst_46 = arith.constant 0.135335281 : f32
    %86 = vector.broadcast %cst_46 : f32 to vector<18x128xf32>
    %87 = arith.mulf %86, %85 : vector<18x128xf32>
    %88 = arith.addf %82, %87 : vector<18x128xf32>
    %89 = vector.extract_strided_slice %88 {offsets = [1, 0], sizes = [16, 128], strides = [1, 1]} : vector<18x128xf32> to vector<16x128xf32>
    %c0_47 = arith.constant 0 : index
    %c0_48 = arith.constant 0 : index
    %c0_49 = arith.constant 0 : index
    %c0_50 = arith.constant 0 : index
    %90 = vector.load %arg3[%c0_47, %c0_48, %c0_49, %c0_50] : memref<1x3x16x128xf32, #tpu.memory_space<vmem>>, vector<1x1x16x128xf32>
    %91 = vector.shape_cast %90 : vector<1x1x16x128xf32> to vector<16x128xf32>
    %92 = vector.shape_cast %89 : vector<16x128xf32> to vector<1x1x16x128xf32>
    tpu.vector_store %arg3[%c0_47, %c0_48, %c0_49, %c0_50], %92 {strides = array<i32>} : memref<1x3x16x128xf32, #tpu.memory_space<vmem>>, vector<1x1x16x128xf32>,
    %cst_51 = arith.constant 0.000000e+00 : f32
    %93 = vector.broadcast %cst_51 : f32 to vector<18x128xf32>
    %94 = arith.select %33, %88, %93 : vector<18x128xi1>, vector<18x128xf32>
    %c1_i32_52 = arith.constant 1 : i32
    %95 = tpu.dynamic_rotate %94 by %c1_i32_52 dim 1 : vector<18x128xf32>, i32 -> vector<18x128xf32>
    %c127_i32_53 = arith.constant 127 : i32
    %96 = tpu.dynamic_rotate %94 by %c127_i32_53 dim 1 : vector<18x128xf32>, i32 -> vector<18x128xf32>
    %97 = arith.subf %95, %96 : vector<18x128xf32>
    %cst_54 = arith.constant 2.000000e+00 : f32
    %98 = vector.broadcast %cst_54 : f32 to vector<18x128xf32>
    %99 = arith.mulf %98, %94 : vector<18x128xf32>
    %100 = arith.addf %95, %99 : vector<18x128xf32>
    %101 = arith.addf %100, %96 : vector<18x128xf32>
    %102 = vector.extract_strided_slice %97 {offsets = [0, 0], sizes = [16, 128], strides = [1, 1]} : vector<18x128xf32> to vector<16x128xf32>
    %103 = vector.extract_strided_slice %97 {offsets = [1, 0], sizes = [16, 128], strides = [1, 1]} : vector<18x128xf32> to vector<16x128xf32>
    %cst_55 = arith.constant 2.000000e+00 : f32
    %104 = vector.broadcast %cst_55 : f32 to vector<16x128xf32>
    %105 = arith.mulf %104, %103 : vector<16x128xf32>
    %106 = arith.addf %102, %105 : vector<16x128xf32>
    %107 = vector.extract_strided_slice %97 {offsets = [2, 0], sizes = [16, 128], strides = [1, 1]} : vector<18x128xf32> to vector<16x128xf32>
    %108 = arith.addf %106, %107 : vector<16x128xf32>
    %109 = vector.extract_strided_slice %101 {offsets = [0, 0], sizes = [16, 128], strides = [1, 1]} : vector<18x128xf32> to vector<16x128xf32>
    %110 = vector.extract_strided_slice %101 {offsets = [2, 0], sizes = [16, 128], strides = [1, 1]} : vector<18x128xf32> to vector<16x128xf32>
    %111 = arith.subf %109, %110 : vector<16x128xf32>
    %112 = arith.mulf %108, %108 : vector<16x128xf32>
    %113 = arith.mulf %111, %111 : vector<16x128xf32>
    %114 = arith.addf %112, %113 : vector<16x128xf32>
    %115 = math.sqrt %114 : vector<16x128xf32>
    %116 = arith.addf %35, %115 : vector<16x128xf32>
    %117 = arith.addf %36, %108 : vector<16x128xf32>
    %118 = arith.addf %37, %111 : vector<16x128xf32>
    %c3_i32_56 = arith.constant 3 : i32
    %119 = arith.muli %arg1, %c3_i32_56 : i32
    %c1_i32_57 = arith.constant 1 : i32
    %120 = arith.addi %119, %c1_i32_57 : i32
    %c22_i32_58 = arith.constant 22 : i32
    %121 = arith.muli %120, %c22_i32_58 : i32
    %c16_i32_59 = arith.constant 16 : i32
    %122 = arith.muli %arg0, %c16_i32_59 : i32
    %123 = arith.addi %121, %122 : i32
    %c1_i32_60 = arith.constant 1 : i32
    %c1_i32_61 = arith.constant 1 : i32
    %c0_i32_62 = arith.constant 0 : i32
    %124 = tpu.memref_slice %arg2[%123, %c0_i32_62] : memref<132x128xf32, #tpu.memory_space<any>> -> memref<22x128xf32, #tpu.memory_space<any>>
    %c0_i32_63 = arith.constant 0 : i32
    %c0_i32_64 = arith.constant 0 : i32
    %125 = tpu.memref_slice %arg7[%c1_i32_60, %c0_i32_63, %c0_i32_64] : memref<3x22x128xf32, #tpu.memory_space<vmem>> -> memref<1x22x128xf32, #tpu.memory_space<vmem>>
    %126 = tpu.memref_squeeze %125 : memref<1x22x128xf32, #tpu.memory_space<vmem>> -> memref<22x128xf32, #tpu.memory_space<vmem>>
    %127 = tpu.memref_slice %arg8[%c1_i32_61] : memref<3x!tpu.dma_semaphore, #tpu.memory_space<semaphore_mem>> -> memref<1x!tpu.dma_semaphore, #tpu.memory_space<semaphore_mem>>
    %128 = tpu.memref_squeeze %127 : memref<1x!tpu.dma_semaphore, #tpu.memory_space<semaphore_mem>> -> memref<!tpu.dma_semaphore, #tpu.memory_space<semaphore_mem>>
    tpu.wait_dma2 semaphore(%128 : memref<!tpu.dma_semaphore, #tpu.memory_space<semaphore_mem>>) src(%124 : memref<22x128xf32, #tpu.memory_space<any>>) dst(%126 : memref<22x128xf32, #tpu.memory_space<vmem>>)
    %c1 = arith.constant 1 : index
    %c0_65 = arith.constant 0 : index
    %c0_66 = arith.constant 0 : index
    %129 = vector.load %arg7[%c1, %c0_65, %c0_66] : memref<3x22x128xf32, #tpu.memory_space<vmem>>, vector<1x22x128xf32>
    %130 = vector.shape_cast %129 : vector<1x22x128xf32> to vector<22x128xf32>
    %c1_i32_67 = arith.constant 1 : i32
    %131 = tpu.dynamic_rotate %130 by %c1_i32_67 dim 1 : vector<22x128xf32>, i32 -> vector<22x128xf32>
    %c127_i32_68 = arith.constant 127 : i32
    %132 = tpu.dynamic_rotate %130 by %c127_i32_68 dim 1 : vector<22x128xf32>, i32 -> vector<22x128xf32>
    %c2_i32_69 = arith.constant 2 : i32
    %133 = tpu.dynamic_rotate %130 by %c2_i32_69 dim 1 : vector<22x128xf32>, i32 -> vector<22x128xf32>
    %c126_i32_70 = arith.constant 126 : i32
    %134 = tpu.dynamic_rotate %130 by %c126_i32_70 dim 1 : vector<22x128xf32>, i32 -> vector<22x128xf32>
    %cst_71 = arith.constant 1.000000e+00 : f32
    %135 = vector.broadcast %cst_71 : f32 to vector<22x128xf32>
    %136 = arith.mulf %135, %130 : vector<22x128xf32>
    %137 = arith.addf %131, %132 : vector<22x128xf32>
    %cst_72 = arith.constant 0.606530666 : f32
    %138 = vector.broadcast %cst_72 : f32 to vector<22x128xf32>
    %139 = arith.mulf %138, %137 : vector<22x128xf32>
    %140 = arith.addf %136, %139 : vector<22x128xf32>
    %141 = arith.addf %133, %134 : vector<22x128xf32>
    %cst_73 = arith.constant 0.135335281 : f32
    %142 = vector.broadcast %cst_73 : f32 to vector<22x128xf32>
    %143 = arith.mulf %142, %141 : vector<22x128xf32>
    %144 = arith.addf %140, %143 : vector<22x128xf32>
    %145 = vector.extract_strided_slice %144 {offsets = [2, 0], sizes = [18, 128], strides = [1, 1]} : vector<22x128xf32> to vector<18x128xf32>
    %cst_74 = arith.constant 1.000000e+00 : f32
    %146 = vector.broadcast %cst_74 : f32 to vector<18x128xf32>
    %147 = arith.mulf %146, %145 : vector<18x128xf32>
    %148 = vector.extract_strided_slice %144 {offsets = [1, 0], sizes = [18, 128], strides = [1, 1]} : vector<22x128xf32> to vector<18x128xf32>
    %149 = vector.extract_strided_slice %144 {offsets = [3, 0], sizes = [18, 128], strides = [1, 1]} : vector<22x128xf32> to vector<18x128xf32>
    %150 = arith.addf %148, %149 : vector<18x128xf32>
    %cst_75 = arith.constant 0.606530666 : f32
    %151 = vector.broadcast %cst_75 : f32 to vector<18x128xf32>
    %152 = arith.mulf %151, %150 : vector<18x128xf32>
    %153 = arith.addf %147, %152 : vector<18x128xf32>
    %154 = vector.extract_strided_slice %144 {offsets = [0, 0], sizes = [18, 128], strides = [1, 1]} : vector<22x128xf32> to vector<18x128xf32>
    %155 = vector.extract_strided_slice %144 {offsets = [4, 0], sizes = [18, 128], strides = [1, 1]} : vector<22x128xf32> to vector<18x128xf32>
    %156 = arith.addf %154, %155 : vector<18x128xf32>
    %cst_76 = arith.constant 0.135335281 : f32
    %157 = vector.broadcast %cst_76 : f32 to vector<18x128xf32>
    %158 = arith.mulf %157, %156 : vector<18x128xf32>
    %159 = arith.addf %153, %158 : vector<18x128xf32>
    %160 = vector.extract_strided_slice %159 {offsets = [1, 0], sizes = [16, 128], strides = [1, 1]} : vector<18x128xf32> to vector<16x128xf32>
    %c0_77 = arith.constant 0 : index
    %c1_78 = arith.constant 1 : index
    %c0_79 = arith.constant 0 : index
    %c0_80 = arith.constant 0 : index
    %161 = vector.load %arg3[%c0_77, %c1_78, %c0_79, %c0_80] : memref<1x3x16x128xf32, #tpu.memory_space<vmem>>, vector<1x1x16x128xf32>
    %162 = vector.shape_cast %161 : vector<1x1x16x128xf32> to vector<16x128xf32>
    %163 = vector.shape_cast %160 : vector<16x128xf32> to vector<1x1x16x128xf32>
    tpu.vector_store %arg3[%c0_77, %c1_78, %c0_79, %c0_80], %163 {strides = array<i32>} : memref<1x3x16x128xf32, #tpu.memory_space<vmem>>, vector<1x1x16x128xf32>,
    %cst_81 = arith.constant 0.000000e+00 : f32
    %164 = vector.broadcast %cst_81 : f32 to vector<18x128xf32>
    %165 = arith.select %33, %159, %164 : vector<18x128xi1>, vector<18x128xf32>
    %c1_i32_82 = arith.constant 1 : i32
    %166 = tpu.dynamic_rotate %165 by %c1_i32_82 dim 1 : vector<18x128xf32>, i32 -> vector<18x128xf32>
    %c127_i32_83 = arith.constant 127 : i32
    %167 = tpu.dynamic_rotate %165 by %c127_i32_83 dim 1 : vector<18x128xf32>, i32 -> vector<18x128xf32>
    %168 = arith.subf %166, %167 : vector<18x128xf32>
    %cst_84 = arith.constant 2.000000e+00 : f32
    %169 = vector.broadcast %cst_84 : f32 to vector<18x128xf32>
    %170 = arith.mulf %169, %165 : vector<18x128xf32>
    %171 = arith.addf %166, %170 : vector<18x128xf32>
    %172 = arith.addf %171, %167 : vector<18x128xf32>
    %173 = vector.extract_strided_slice %168 {offsets = [0, 0], sizes = [16, 128], strides = [1, 1]} : vector<18x128xf32> to vector<16x128xf32>
    %174 = vector.extract_strided_slice %168 {offsets = [1, 0], sizes = [16, 128], strides = [1, 1]} : vector<18x128xf32> to vector<16x128xf32>
    %cst_85 = arith.constant 2.000000e+00 : f32
    %175 = vector.broadcast %cst_85 : f32 to vector<16x128xf32>
    %176 = arith.mulf %175, %174 : vector<16x128xf32>
    %177 = arith.addf %173, %176 : vector<16x128xf32>
    %178 = vector.extract_strided_slice %168 {offsets = [2, 0], sizes = [16, 128], strides = [1, 1]} : vector<18x128xf32> to vector<16x128xf32>
    %179 = arith.addf %177, %178 : vector<16x128xf32>
    %180 = vector.extract_strided_slice %172 {offsets = [0, 0], sizes = [16, 128], strides = [1, 1]} : vector<18x128xf32> to vector<16x128xf32>
    %181 = vector.extract_strided_slice %172 {offsets = [2, 0], sizes = [16, 128], strides = [1, 1]} : vector<18x128xf32> to vector<16x128xf32>
    %182 = arith.subf %180, %181 : vector<16x128xf32>
    %183 = arith.mulf %179, %179 : vector<16x128xf32>
    %184 = arith.mulf %182, %182 : vector<16x128xf32>
    %185 = arith.addf %183, %184 : vector<16x128xf32>
    %186 = math.sqrt %185 : vector<16x128xf32>
    %187 = arith.addf %116, %186 : vector<16x128xf32>
    %188 = arith.addf %117, %179 : vector<16x128xf32>
    %189 = arith.addf %118, %182 : vector<16x128xf32>
    %c3_i32_86 = arith.constant 3 : i32
    %190 = arith.muli %arg1, %c3_i32_86 : i32
    %c2_i32_87 = arith.constant 2 : i32
    %191 = arith.addi %190, %c2_i32_87 : i32
    %c22_i32_88 = arith.constant 22 : i32
    %192 = arith.muli %191, %c22_i32_88 : i32
    %c16_i32_89 = arith.constant 16 : i32
    %193 = arith.muli %arg0, %c16_i32_89 : i32
    %194 = arith.addi %192, %193 : i32
    %c2_i32_90 = arith.constant 2 : i32
    %c2_i32_91 = arith.constant 2 : i32
    %c0_i32_92 = arith.constant 0 : i32
    %195 = tpu.memref_slice %arg2[%194, %c0_i32_92] : memref<132x128xf32, #tpu.memory_space<any>> -> memref<22x128xf32, #tpu.memory_space<any>>
    %c0_i32_93 = arith.constant 0 : i32
    %c0_i32_94 = arith.constant 0 : i32
    %196 = tpu.memref_slice %arg7[%c2_i32_90, %c0_i32_93, %c0_i32_94] : memref<3x22x128xf32, #tpu.memory_space<vmem>> -> memref<1x22x128xf32, #tpu.memory_space<vmem>>
    %197 = tpu.memref_squeeze %196 : memref<1x22x128xf32, #tpu.memory_space<vmem>> -> memref<22x128xf32, #tpu.memory_space<vmem>>
    %198 = tpu.memref_slice %arg8[%c2_i32_91] : memref<3x!tpu.dma_semaphore, #tpu.memory_space<semaphore_mem>> -> memref<1x!tpu.dma_semaphore, #tpu.memory_space<semaphore_mem>>
    %199 = tpu.memref_squeeze %198 : memref<1x!tpu.dma_semaphore, #tpu.memory_space<semaphore_mem>> -> memref<!tpu.dma_semaphore, #tpu.memory_space<semaphore_mem>>
    tpu.wait_dma2 semaphore(%199 : memref<!tpu.dma_semaphore, #tpu.memory_space<semaphore_mem>>) src(%195 : memref<22x128xf32, #tpu.memory_space<any>>) dst(%197 : memref<22x128xf32, #tpu.memory_space<vmem>>)
    %c2 = arith.constant 2 : index
    %c0_95 = arith.constant 0 : index
    %c0_96 = arith.constant 0 : index
    %200 = vector.load %arg7[%c2, %c0_95, %c0_96] : memref<3x22x128xf32, #tpu.memory_space<vmem>>, vector<1x22x128xf32>
    %201 = vector.shape_cast %200 : vector<1x22x128xf32> to vector<22x128xf32>
    %c1_i32_97 = arith.constant 1 : i32
    %202 = tpu.dynamic_rotate %201 by %c1_i32_97 dim 1 : vector<22x128xf32>, i32 -> vector<22x128xf32>
    %c127_i32_98 = arith.constant 127 : i32
    %203 = tpu.dynamic_rotate %201 by %c127_i32_98 dim 1 : vector<22x128xf32>, i32 -> vector<22x128xf32>
    %c2_i32_99 = arith.constant 2 : i32
    %204 = tpu.dynamic_rotate %201 by %c2_i32_99 dim 1 : vector<22x128xf32>, i32 -> vector<22x128xf32>
    %c126_i32_100 = arith.constant 126 : i32
    %205 = tpu.dynamic_rotate %201 by %c126_i32_100 dim 1 : vector<22x128xf32>, i32 -> vector<22x128xf32>
    %cst_101 = arith.constant 1.000000e+00 : f32
    %206 = vector.broadcast %cst_101 : f32 to vector<22x128xf32>
    %207 = arith.mulf %206, %201 : vector<22x128xf32>
    %208 = arith.addf %202, %203 : vector<22x128xf32>
    %cst_102 = arith.constant 0.606530666 : f32
    %209 = vector.broadcast %cst_102 : f32 to vector<22x128xf32>
    %210 = arith.mulf %209, %208 : vector<22x128xf32>
    %211 = arith.addf %207, %210 : vector<22x128xf32>
    %212 = arith.addf %204, %205 : vector<22x128xf32>
    %cst_103 = arith.constant 0.135335281 : f32
    %213 = vector.broadcast %cst_103 : f32 to vector<22x128xf32>
    %214 = arith.mulf %213, %212 : vector<22x128xf32>
    %215 = arith.addf %211, %214 : vector<22x128xf32>
    %216 = vector.extract_strided_slice %215 {offsets = [2, 0], sizes = [18, 128], strides = [1, 1]} : vector<22x128xf32> to vector<18x128xf32>
    %cst_104 = arith.constant 1.000000e+00 : f32
    %217 = vector.broadcast %cst_104 : f32 to vector<18x128xf32>
    %218 = arith.mulf %217, %216 : vector<18x128xf32>
    %219 = vector.extract_strided_slice %215 {offsets = [1, 0], sizes = [18, 128], strides = [1, 1]} : vector<22x128xf32> to vector<18x128xf32>
    %220 = vector.extract_strided_slice %215 {offsets = [3, 0], sizes = [18, 128], strides = [1, 1]} : vector<22x128xf32> to vector<18x128xf32>
    %221 = arith.addf %219, %220 : vector<18x128xf32>
    %cst_105 = arith.constant 0.606530666 : f32
    %222 = vector.broadcast %cst_105 : f32 to vector<18x128xf32>
    %223 = arith.mulf %222, %221 : vector<18x128xf32>
    %224 = arith.addf %218, %223 : vector<18x128xf32>
    %225 = vector.extract_strided_slice %215 {offsets = [0, 0], sizes = [18, 128], strides = [1, 1]} : vector<22x128xf32> to vector<18x128xf32>
    %226 = vector.extract_strided_slice %215 {offsets = [4, 0], sizes = [18, 128], strides = [1, 1]} : vector<22x128xf32> to vector<18x128xf32>
    %227 = arith.addf %225, %226 : vector<18x128xf32>
    %cst_106 = arith.constant 0.135335281 : f32
    %228 = vector.broadcast %cst_106 : f32 to vector<18x128xf32>
    %229 = arith.mulf %228, %227 : vector<18x128xf32>
    %230 = arith.addf %224, %229 : vector<18x128xf32>
    %231 = vector.extract_strided_slice %230 {offsets = [1, 0], sizes = [16, 128], strides = [1, 1]} : vector<18x128xf32> to vector<16x128xf32>
    %c0_107 = arith.constant 0 : index
    %c2_108 = arith.constant 2 : index
    %c0_109 = arith.constant 0 : index
    %c0_110 = arith.constant 0 : index
    %232 = vector.load %arg3[%c0_107, %c2_108, %c0_109, %c0_110] : memref<1x3x16x128xf32, #tpu.memory_space<vmem>>, vector<1x1x16x128xf32>
    %233 = vector.shape_cast %232 : vector<1x1x16x128xf32> to vector<16x128xf32>
    %234 = vector.shape_cast %231 : vector<16x128xf32> to vector<1x1x16x128xf32>
    tpu.vector_store %arg3[%c0_107, %c2_108, %c0_109, %c0_110], %234 {strides = array<i32>} : memref<1x3x16x128xf32, #tpu.memory_space<vmem>>, vector<1x1x16x128xf32>,
    %cst_111 = arith.constant 0.000000e+00 : f32
    %235 = vector.broadcast %cst_111 : f32 to vector<18x128xf32>
    %236 = arith.select %33, %230, %235 : vector<18x128xi1>, vector<18x128xf32>
    %c1_i32_112 = arith.constant 1 : i32
    %237 = tpu.dynamic_rotate %236 by %c1_i32_112 dim 1 : vector<18x128xf32>, i32 -> vector<18x128xf32>
    %c127_i32_113 = arith.constant 127 : i32
    %238 = tpu.dynamic_rotate %236 by %c127_i32_113 dim 1 : vector<18x128xf32>, i32 -> vector<18x128xf32>
    %239 = arith.subf %237, %238 : vector<18x128xf32>
    %cst_114 = arith.constant 2.000000e+00 : f32
    %240 = vector.broadcast %cst_114 : f32 to vector<18x128xf32>
    %241 = arith.mulf %240, %236 : vector<18x128xf32>
    %242 = arith.addf %237, %241 : vector<18x128xf32>
    %243 = arith.addf %242, %238 : vector<18x128xf32>
    %244 = vector.extract_strided_slice %239 {offsets = [0, 0], sizes = [16, 128], strides = [1, 1]} : vector<18x128xf32> to vector<16x128xf32>
    %245 = vector.extract_strided_slice %239 {offsets = [1, 0], sizes = [16, 128], strides = [1, 1]} : vector<18x128xf32> to vector<16x128xf32>
    %cst_115 = arith.constant 2.000000e+00 : f32
    %246 = vector.broadcast %cst_115 : f32 to vector<16x128xf32>
    %247 = arith.mulf %246, %245 : vector<16x128xf32>
    %248 = arith.addf %244, %247 : vector<16x128xf32>
    %249 = vector.extract_strided_slice %239 {offsets = [2, 0], sizes = [16, 128], strides = [1, 1]} : vector<18x128xf32> to vector<16x128xf32>
    %250 = arith.addf %248, %249 : vector<16x128xf32>
    %251 = vector.extract_strided_slice %243 {offsets = [0, 0], sizes = [16, 128], strides = [1, 1]} : vector<18x128xf32> to vector<16x128xf32>
    %252 = vector.extract_strided_slice %243 {offsets = [2, 0], sizes = [16, 128], strides = [1, 1]} : vector<18x128xf32> to vector<16x128xf32>
    %253 = arith.subf %251, %252 : vector<16x128xf32>
    %254 = arith.mulf %250, %250 : vector<16x128xf32>
    %255 = arith.mulf %253, %253 : vector<16x128xf32>
    %256 = arith.addf %254, %255 : vector<16x128xf32>
    %257 = math.sqrt %256 : vector<16x128xf32>
    %258 = arith.addf %187, %257 : vector<16x128xf32>
    %259 = arith.addf %188, %250 : vector<16x128xf32>
    %260 = arith.addf %189, %253 : vector<16x128xf32>
    %261 = math.absf %259 : vector<16x128xf32>
    %262 = math.absf %260 : vector<16x128xf32>
    %cst_116 = arith.constant 2.41421366 : f32
    %263 = vector.broadcast %cst_116 : f32 to vector<16x128xf32>
    %264 = arith.mulf %263, %261 : vector<16x128xf32>
    %265 = arith.cmpf ogt, %262, %264 : vector<16x128xf32>
    %cst_117 = arith.constant 0.414213568 : f32
    %266 = vector.broadcast %cst_117 : f32 to vector<16x128xf32>
    %267 = arith.mulf %266, %261 : vector<16x128xf32>
    %268 = arith.cmpf ole, %262, %267 : vector<16x128xf32>
    %cst_118 = arith.constant 0.000000e+00 : f32
    %cst_119 = arith.constant 1.000000e+00 : f32
    %269 = vector.broadcast %cst_118 : f32 to vector<16x128xf32>
    %270 = vector.broadcast %cst_119 : f32 to vector<16x128xf32>
    %271 = arith.select %268, %269, %270 : vector<16x128xi1>, vector<16x128xf32>
    %cst_120 = arith.constant 2.000000e+00 : f32
    %272 = vector.broadcast %cst_120 : f32 to vector<16x128xf32>
    %273 = arith.select %265, %272, %271 : vector<16x128xi1>, vector<16x128xf32>
    %cst_121 = arith.constant 0.000000e+00 : f32
    %274 = vector.broadcast %cst_121 : f32 to vector<16x128xf32>
    %275 = arith.cmpf oge, %259, %274 : vector<16x128xf32>
    %cst_122 = arith.constant 4.000000e+00 : f32
    %276 = vector.broadcast %cst_122 : f32 to vector<16x128xf32>
    %277 = arith.subf %276, %273 : vector<16x128xf32>
    %278 = arith.select %275, %273, %277 : vector<16x128xi1>, vector<16x128xf32>
    %cst_123 = arith.constant 0.000000e+00 : f32
    %279 = vector.broadcast %cst_123 : f32 to vector<16x128xf32>
    %280 = arith.cmpf oge, %260, %279 : vector<16x128xf32>
    %cst_124 = arith.constant 0.000000e+00 : f32
    %281 = vector.broadcast %cst_124 : f32 to vector<16x128xf32>
    %282 = arith.subf %281, %278 : vector<16x128xf32>
    %283 = arith.select %280, %278, %282 : vector<16x128xi1>, vector<16x128xf32>
    %cst_125 = arith.constant 4.000000e+00 : f32
    %284 = vector.broadcast %cst_125 : f32 to vector<16x128xf32>
    %285 = arith.addf %283, %284 : vector<16x128xf32>
    %cst_126 = arith.constant 0.000000e+00 : f32
    %286 = vector.broadcast %cst_126 : f32 to vector<16x128xf32>
    %287 = arith.select %34, %258, %286 : vector<16x128xi1>, vector<16x128xf32>
    %c0_127 = arith.constant 0 : index
    %c0_128 = arith.constant 0 : index
    %c0_129 = arith.constant 0 : index
    %288 = vector.load %arg4[%c0_127, %c0_128, %c0_129] : memref<1x16x128xf32, #tpu.memory_space<vmem>>, vector<1x16x128xf32>
    %289 = vector.shape_cast %288 : vector<1x16x128xf32> to vector<16x128xf32>
    %290 = vector.shape_cast %287 : vector<16x128xf32> to vector<1x16x128xf32>
    tpu.vector_store %arg4[%c0_127, %c0_128, %c0_129], %290 {strides = array<i32>} : memref<1x16x128xf32, #tpu.memory_space<vmem>>, vector<1x16x128xf32>,
    %cst_130 = arith.constant 4.500000e+01 : f32
    %291 = vector.broadcast %cst_130 : f32 to vector<16x128xf32>
    %292 = arith.mulf %291, %285 : vector<16x128xf32>
    %c0_131 = arith.constant 0 : index
    %c0_132 = arith.constant 0 : index
    %c0_133 = arith.constant 0 : index
    %293 = vector.load %arg5[%c0_131, %c0_132, %c0_133] : memref<1x16x128xf32, #tpu.memory_space<vmem>>, vector<1x16x128xf32>
    %294 = vector.shape_cast %293 : vector<1x16x128xf32> to vector<16x128xf32>
    %295 = vector.shape_cast %292 : vector<16x128xf32> to vector<1x16x128xf32>
    tpu.vector_store %arg5[%c0_131, %c0_132, %c0_133], %295 {strides = array<i32>} : memref<1x16x128xf32, #tpu.memory_space<vmem>>, vector<1x16x128xf32>,
    %cst_134 = arith.constant 1.000000e+01 : f32
    %296 = vector.broadcast %cst_134 : f32 to vector<16x128xf32>
    %297 = arith.cmpf olt, %287, %296 : vector<16x128xf32>
    %cst_135 = arith.constant 0.000000e+00 : f32
    %298 = vector.broadcast %cst_135 : f32 to vector<16x128xf32>
    %299 = arith.select %297, %298, %287 : vector<16x128xi1>, vector<16x128xf32>
    %c0_136 = arith.constant 0 : index
    %c0_137 = arith.constant 0 : index
    %c0_138 = arith.constant 0 : index
    %300 = vector.load %arg6[%c0_136, %c0_137, %c0_138] : memref<1x16x128xf32, #tpu.memory_space<vmem>>, vector<1x16x128xf32>
    %301 = vector.shape_cast %300 : vector<1x16x128xf32> to vector<16x128xf32>
    %302 = vector.shape_cast %299 : vector<16x128xf32> to vector<1x16x128xf32>
    tpu.vector_store %arg6[%c0_136, %c0_137, %c0_138], %302 {strides = array<i32>} : memref<1x16x128xf32, #tpu.memory_space<vmem>>, vector<1x16x128xf32>,
    return
  }
  func.func @transform_1(%arg0: i32, %arg1: i32) -> (i32, i32, i32, i32) {
    %c0_i32 = arith.constant 0 : i32
    %c0_i32_0 = arith.constant 0 : i32
    %c0_i32_1 = arith.constant 0 : i32
    return %arg1, %c0_i32, %arg0, %c0_i32_0 : i32, i32, i32, i32
  }
  func.func @transform_2(%arg0: i32, %arg1: i32) -> (i32, i32, i32) {
    %c0_i32 = arith.constant 0 : i32
    %c0_i32_0 = arith.constant 0 : i32
    return %arg1, %arg0, %c0_i32 : i32, i32, i32
  }
  func.func @transform_3(%arg0: i32, %arg1: i32) -> (i32, i32, i32) {
    %c0_i32 = arith.constant 0 : i32
    %c0_i32_0 = arith.constant 0 : i32
    return %arg1, %arg0, %c0_i32 : i32, i32, i32
  }
  func.func @transform_4(%arg0: i32, %arg1: i32) -> (i32, i32, i32) {
    %c0_i32 = arith.constant 0 : i32
    %c0_i32_0 = arith.constant 0 : i32
    return %arg1, %arg0, %c0_i32 : i32, i32, i32
  }
}

</mosaic_0001>

<bundles_post_ra>
// kernel: tpu_custom_call.1
= control target key start
LH: loop header
LB: loop body
LE: loop exit
PB: predicated region body
PF: predicated region fallthrough
CT: control target
= control target key end

     0   :  { %10 = vsyncpa [#allocation5], 0  ;;  %s2087_s0 = inlined_call_operand.hbm [shape: f32[132,128], index: 0, kind: input, shape index: {}]   ;;  %s2088_s1 = inlined_call_operand.hbm [shape: f32[2,3,16,128], index: 1, kind: output, shape index: {0}]   ;;  %s2089_s2 = inlined_call_operand.hbm [shape: f32[2,16,128], index: 2, kind: output, shape index: {1}]   ;;  %s2090_s3 = inlined_call_operand.hbm [shape: f32[2,16,128], index: 3, kind: output, shape index: {2}]   ;;  %s2091_s4 = inlined_call_operand.hbm [shape: f32[2,16,128], index: 4, kind: output, shape index: {3}]  }
   0x1   :  { %12 = vsyncpa [#allocation5 + $0x1], 0 }
   0x2   :  { %13 = vsyncpa [#allocation7], 0 }
   0x3   :  { %15 = vsyncpa [#allocation7 + $0x1], 0 }
   0x4   :  { %16 = vsyncpa [#allocation10], 0 }
   0x5   :  { %18 = vsyncpa [#allocation10 + $0x1], 0  ;;  %s1596_s15 = smov 0   ;;  %s1598_s16 = smov 0  }
   0x6   :  { %s1600_s17 = smov 0   ;;  %s1602_s18 = smov 0  }
   0x7 LB: > { %s30_s19 = sadd.s32 1, %s1551_s17  ;;  %s2092_s20 = sadd.s32 4294967295, %s1555_s18   ;;  %s1555_s18 = sphi %s1602_s18, %s24_s18   ;;  %s1551_s17 = sphi %s1600_s17, %s2102_s17   ;;  %s1547_s16 = sphi %s1598_s16, %s2101_s16   ;;  %s1543_s15 = sphi %s1596_s15, %s2100_s15  }
   0x8   : > { %p31_p0 = scmp.ge.s32.totalorder %s30_s19, 2  ;;  %p51_p1 = scmp.ne.s32.totalorder %s1547_s16, %s1543_s15 }
   0x9   : > { %s42_s21 = sadd.s32 1, %s1547_s16  ;;  %p52_p2 = scmp.eq.s32.totalorder %s2092_s20, 1 }
   0xa   : > { %s2104_s19 = smov (%p31_p0, %s30_s19), 0  ;;  %p46_p3 = scmp.eq.s32.totalorder %s1555_s18, 1 }
   0xb   : > { %s37_s22 = ssub.s32 %s1551_s17, %s2104_s19  ;;  %p1628_p6 = por %p52_p2, %p51_p1 }
   0xc   : > { %p40_p4 = scmp.eq.s32.totalorder %s37_s22, 0  ;;  %p1205_p5 = scmp.ne.s32.totalorder %s37_s22, 0 }
   0xd   : > { %p1209_p8 = scmp.ge.s32.totalorder %s1555_s18, 2 }
   0xe   : > { %s1633_s24 = scalar_select %p40_p4, %s1547_s16, %s42_s21  }
   0xf   : > { %p1635_p7 = por %p1205_p5, %p46_p3  ;;  %124 = sbr.rel (%p1209_p8) target bundleno = 1099 (0x44b), region = 12  ;;  %v192_v0 = vlaneseq (!%p1209_p8) }
  0x10   : > { %s1641_s26 = sand.u32 (!%p1209_p8), 1, %s1547_s16   ;;  %s1239_s27 = smul.u32 (!%p1209_p8), 1056, %s1551_s17 }
  0x11   : > { %s1243_s28 = smul.u32 (!%p1209_p8), 48, %s1641_s26  ;;  %s1646_s29 = sshll.u32 (!%p1209_p8), %s1641_s26, 4  ;;  %v193_v1 = vshrl.u32 (!%p1209_p8), %v192_v0, 7  ;;  %v1648_v2 = vand.u32 (!%p1209_p8), 127, %v192_v0 }
  0x12   : > { %s1653_s6 = scalar_lea.hbm (!%p1209_p8), %s2087_s0, %s1239_s27  ;;  %s1557_s7 = smov (!%p1209_p8), [#allocation2]  }
  0x13   : > { %v195_v3 = vadd.s32 (!%p1209_p8), 16, %v193_v1  ;;  %v198_v4 = vadd.s32 (!%p1209_p8), 4294967295, %v193_v1  ;;  %vm212_vm0 = vcmp.lt.s32.totalorder (!%p1209_p8), %v1648_v2, 16  ;;  %s169_s8 = sshll.u32 (!%p1209_p8), %s1557_s7, 4  ;;  %s1657_s9 = scalar_lea.hbm (!%p1209_p8), %s1653_s6, 352  ;;  %s1659_s8 = int_to_ptr.vmem [resolvable:$true] %s169_s8 }
  0x14   : > { %p1322_p9 = scmp.ne.s32.totalorder (!%p1209_p8), %s1653_s6, %s1657_s9  ;;  %s1666_s12 = scalar_lea.hbm (!%p1209_p8), %s2087_s0, 2176 }
  0x15   : > { %v200_v5 = vadd.s32 (!%p1209_p8), 4294967295, %v195_v3  ;;  %vm203_vm1 = vcmp.ge.s32.totalorder (!%p1209_p8), %v198_v4, 0  ;;  %p1324_p10 = scmp.lt.u32.totalorder (!%p1209_p8), %s1653_s6, %s2087_s0  ;;  %p1325_p11 = scmp.lt.u32.totalorder (!%p1209_p8), %s1666_s12, %s1657_s9 }
  0x16   : > { %p1327_p13 = scmp.lt.u32.totalorder %s1657_s9, %s1653_s6 }
  0x17   : > { %p1326_p12 = por %p1325_p11, %p1324_p10 }
  0x19   : > { %p1328_p0 = por %p1327_p13, %p1326_p12 }
  0x1b   : > { %p1329_p1 = pnand %p1328_p0, %p1322_p9 }
  0x1d   : > { %1332 = shalt.err (!%p1329_p1)  }
  0x1e   : > { %s1333_s21 = scalar_lea.vmem %s1659_s8, 352  ;;  %s1679_s22 = scalar_lea.vmem %s1659_s8, 1152 }
  0x1f   : > { %p1334_p2 = scmp.ne.s32.totalorder %s1659_s8, %s1333_s21  ;;  %p1338_p3 = scmp.lt.s32.totalorder %s1659_s8, %s1659_s8 }
  0x20   : > { %p1339_p4 = scmp.lt.s32.totalorder %s1679_s22, %s1333_s21 }
  0x22   : > { %p1340_p5 = por %p1339_p4, %p1338_p3 }
  0x24   : > { %p1341_p8 = pnand %p1340_p5, %p1334_p2 }
  0x26   : > { %1344 = shalt.err (!%p1341_p8)  }
  0x27   : > { %172 = dma.hbm_to_vmem [thread:$0]  %s1653_s6, 352, %s1659_s8, [#allocation3]  ;;  %vm1689_vm2 = vmand %vm203_vm1, %vm212_vm0  ;;  %vm208_vm3 = vcmp.lt.s32.totalorder %v200_v5, 16 }
  0x28   : > { %s1558_s27 = smov [#allocation2 + $0x18]   ;;  %vm1695_vm4 = vmand %vm208_vm3, %vm212_vm0  ;;  %s1700_s5 = scalar_lea.hbm %s1653_s6, 704 }
  0x29   : > { %s188_s30 = sshll.u32 %s1558_s27, 4  ;;  %p1346_p9 = scmp.ne.s32.totalorder %s1657_s9, %s1700_s5  ;;  %s189_s30 = int_to_ptr.vmem [resolvable:$true] %s188_s30 }
  0x2a   : > { %p1348_p10 = scmp.lt.u32.totalorder %s1657_s9, %s2087_s0  ;;  %p1349_p11 = scmp.lt.u32.totalorder %s1666_s12, %s1700_s5 }
  0x2b   : > { %p1351_p13 = scmp.lt.u32.totalorder %s1700_s5, %s1657_s9 }
  0x2c   : > { %p1350_p12 = por %p1349_p11, %p1348_p10 }
  0x2e   : > { %p1352_p0 = por %p1351_p13, %p1350_p12 }
  0x30   : > { %p1353_p1 = pnand %p1352_p0, %p1346_p9 }
  0x32   : > { %1356 = shalt.err (!%p1353_p1)  }
  0x33   : > { %s1357_s11 = scalar_lea.vmem %s189_s30, 352  ;;  %p1362_p3 = scmp.lt.s32.totalorder %s189_s30, %s1659_s8 }
  0x34   : > { %p1358_p2 = scmp.ne.s32.totalorder %s189_s30, %s1357_s11  ;;  %p1363_p4 = scmp.lt.s32.totalorder %s1679_s22, %s1357_s11 }
  0x36   : > { %p1364_p5 = por %p1363_p4, %p1362_p3 }
  0x38   : > { %p1365_p8 = pnand %p1364_p5, %p1358_p2 }
  0x3a   : > { %1368 = shalt.err (!%p1365_p8)  }
  0x3b   : > { %191 = dma.hbm_to_vmem [thread:$0]  %s1657_s9, 352, %s189_s30, [#allocation3 + $0x1] }
  0x3c   : > { %s1717_s13 = scalar_lea.vmem [#allocation4], %s1243_s28  ;;  %s1720_s14 = scalar_lea.vmem [#allocation6], %s1646_s29 }
  0x3d   : > { %s1723_s21 = scalar_lea.vmem [#allocation8], %s1646_s29  ;;  %s1726_s27 = scalar_lea.vmem [#allocation9], %s1646_s29 }
  0x3e   : > { %1523 = dma.done.wait [#allocation3], 352 }
  0x3f   : > { %1524 = vsyncadd [#allocation3], 4294966944  ;;  %s1559_s7 = smov [#allocation2 + $0x30]   ;;  %s1394_s9 = scalar_lea.hbm %s1653_s6, 1056 }
  0x40   : > { %s233_s10 = sshll.u32 %s1559_s7, 4  ;;  %p1371_p9 = scmp.ne.s32.totalorder %s1700_s5, %s1394_s9  ;;  %s234_s10 = int_to_ptr.vmem [resolvable:$true] %s233_s10 }
  0x41   : > { %p1373_p10 = scmp.lt.u32.totalorder %s1700_s5, %s2087_s0  ;;  %p1374_p11 = scmp.lt.u32.totalorder %s1666_s12, %s1394_s9 }
  0x42   : > { %p1376_p13 = scmp.lt.u32.totalorder %s1394_s9, %s1700_s5 }
  0x43   : > { %p1375_p12 = por %p1374_p11, %p1373_p10 }
  0x45   : > { %p1377_p0 = por %p1376_p13, %p1375_p12 }
  0x47   : > { %p1378_p1 = pnand %p1377_p0, %p1371_p9 }
  0x49   : > { %1381 = shalt.err (!%p1378_p1)  }
  0x4a   : > { %s1382_s29 = scalar_lea.vmem %s234_s10, 352  ;;  %p1387_p3 = scmp.lt.s32.totalorder %s234_s10, %s1659_s8 }
  0x4b   : > { %p1383_p2 = scmp.ne.s32.totalorder %s234_s10, %s1382_s29  ;;  %p1388_p4 = scmp.lt.s32.totalorder %s1679_s22, %s1382_s29 }
  0x4d   : > { %p1389_p5 = por %p1388_p4, %p1387_p3 }
  0x4f   : > { %p1390_p8 = pnand %p1389_p5, %p1383_p2 }
  0x51   : > { %1393 = shalt.err (!%p1390_p8)  }
  0x52   : > { %236 = dma.hbm_to_vmem [thread:$0]  %s1700_s5, 352, %s234_s10, [#allocation3 + $0x2]  ;;  %vm285_vm5 = vcmask 1045504   ;;  %vm315_vm6 = vcmask 1043456   ;;  %vm303_vm7 = vcmask 1040384   ;;  %vm333_vm8 = vcmask 1041408  }
  0x53   : > { %v239_v8 = vld [vmem:[#allocation2 + $0x10] sm:$0x3f]  ;;  %v237_v9 = vld [vmem:[#allocation2] sm:$0xff]  ;;  %s1560_s6 = smov 1   ;;  %v238_v10 = vld [vmem:[#allocation2 + $0x8] sm:$0xff]  ;;  %s1561_s12 = smov 127  }
  0x54   : > { %244 = vrot.lane.b32.xlu1 %v239_v8, %s1560_s6  ;;  %240 = vrot.lane.b32.xlu0 %v237_v9, %s1560_s6  ;;  %s1562_s8 = smov 2   ;;  %s1563_s22 = smov 126   ;;  %vm392_vm9 = vcmask 1046528  }
  0x58   : > { %246 = vrot.lane.b32.xlu1 %v237_v9, %s1561_s12  ;;  %242 = vrot.lane.b32.xlu0 %v238_v10, %s1560_s6 }
  0x5c   : > { %250 = vrot.lane.b32.xlu1 %v239_v8, %s1561_s12  ;;  %248 = vrot.lane.b32.xlu0 %v238_v10, %s1561_s12 }
  0x60   : > { %254 = vrot.lane.b32.xlu1 %v238_v10, %s1562_s8  ;;  %252 = vrot.lane.b32.xlu0 %v237_v9, %s1562_s8 }
  0x64   : > { %258 = vrot.lane.b32.xlu1 %v237_v9, %s1563_s22  ;;  %256 = vrot.lane.b32.xlu0 %v239_v8, %s1562_s8 }
  0x68   : > { %262 = vrot.lane.b32.xlu1 %v239_v8, %s1563_s22  ;;  %260 = vrot.lane.b32.xlu0 %v238_v10, %s1563_s22 }
  0xc6   : > { %v245_v11 = vpop.permute.xlu1 %244  ;;  %v241_v12 = vpop.permute.xlu0 %240 }
  0xca   : > { %v247_v13 = vpop.permute.xlu1 %246  ;;  %v243_v14 = vpop.permute.xlu0 %242 }
  0xcb   : > { %v264_v19 = vadd.f32 %v247_v13, %v241_v12 }
  0xcd   : > { %v267_v25 = vmul.f32 0.60653067, %v264_v19 }
  0xce   : > { %v251_v15 = vpop.permute.xlu1 %250  ;;  %v249_v16 = vpop.permute.xlu0 %248 }
  0xcf   : > { %v266_v20 = vadd.f32 %v251_v15, %v245_v11  ;;  %v265_v21 = vadd.f32 %v249_v16, %v243_v14  ;;  %v270_v33 = vadd.f32 %v267_v25, %v237_v9 }
  0xd1   : > { %v269_v26 = vmul.f32 0.60653067, %v266_v20  ;;  %v268_v27 = vmul.f32 0.60653067, %v265_v21 }
  0xd2   : > { %v255_v17 = vpop.permute.xlu1 %254  ;;  %v253_v18 = vpop.permute.xlu0 %252 }
  0xd3   : > { %v272_v34 = vadd.f32 %v269_v26, %v239_v8  ;;  %v271_v35 = vadd.f32 %v268_v27, %v238_v10 }
  0xd6   : > { %v259_v22 = vpop.permute.xlu1 %258  ;;  %v257_v23 = vpop.permute.xlu0 %256 }
  0xd7   : > { %v273_v24 = vadd.f32 %v259_v22, %v253_v18 }
  0xd9   : > { %v276_v28 = vmul.f32 0.13533528, %v273_v24 }
  0xda   : > { %v263_v29 = vpop.permute.xlu1 %262  ;;  %v261_v30 = vpop.permute.xlu0 %260 }
  0xdb   : > { %v275_v31 = vadd.f32 %v263_v29, %v257_v23  ;;  %v274_v32 = vadd.f32 %v261_v30, %v255_v17  ;;  %v279_v38 = vadd.f32 %v276_v28, %v270_v33 }
  0xdd   : > { %v278_v36 = vmul.f32 0.13533528, %v275_v31  ;;  %v277_v37 = vmul.f32 0.13533528, %v274_v32  ;;  %v286_v45 = vrot.slane %v279_v38, 2  ;;  %v316_v46 = vrot.slane %v279_v38, 4 }
  0xdf   : > { %v281_v39 = vadd.f32 %v278_v36, %v272_v34  ;;  %v280_v40 = vadd.f32 %v277_v37, %v271_v35 }
  0xe1   : > { %v289_v41 = vrot.slane %v281_v39, 2  ;;  %v287_v42 = vrot.slane %v280_v40, 2  ;;  %v317_v43 = vrot.slane %v280_v40, 4  ;;  %v319_v44 = vrot.slane %v281_v39, 4 }
  0xe3   : > { %v290_v47 = vsel %vm285_vm5, %v287_v42, %v289_v41  ;;  %v296_v48 = vadd.f32 %v289_v41, %v281_v39  ;;  %v320_v49 = vsel %vm315_vm6, %v317_v43, %v319_v44  ;;  %v326_v50 = vadd.f32 %v319_v44, %v281_v39 }
  0xe4   : > { %v295_v51 = vadd.f32 %v290_v47, %v280_v40  ;;  %v325_v52 = vadd.f32 %v320_v49, %v280_v40  ;;  %v288_v53 = vsel %vm285_vm5, %v286_v45, %v287_v42  ;;  %v318_v54 = vsel %vm315_vm6, %v316_v46, %v317_v43 }
  0xe5   : > { %v299_v55 = vmul.f32 0.60653067, %v296_v48  ;;  %v329_v56 = vmul.f32 0.13533528, %v326_v50  ;;  %v294_v57 = vadd.f32 %v288_v53, %v279_v38  ;;  %v324_v58 = vadd.f32 %v318_v54, %v279_v38 }
  0xe6   : > { %v298_v59 = vmul.f32 0.60653067, %v295_v51  ;;  %v328_v60 = vmul.f32 0.13533528, %v325_v52 }
  0xe7   : > { %v307_v61 = vrot.slane %v299_v55, 7  ;;  %v297_v62 = vmul.f32 0.60653067, %v294_v57  ;;  %v327_v63 = vmul.f32 0.13533528, %v324_v58  ;;  %v337_v3 = vrot.slane %v329_v56, 6 }
  0xe8   : > { %v305_v0 = vrot.slane %v298_v59, 7  ;;  %v335_v1 = vrot.slane %v328_v60, 6 }
  0xe9   : > { %v304_v4 = vrot.slane %v297_v62, 7  ;;  %v334_v5 = vrot.slane %v327_v63, 6 }
  0xea   : > { %v308_v8 = vsel %vm303_vm7, %v305_v0, %v307_v61  ;;  %v338_v12 = vsel %vm333_vm8, %v335_v1, %v337_v3 }
  0xeb   : > { %v314_v9 = vadd.f32 %v308_v8, %v281_v39  ;;  %v306_v10 = vsel %vm303_vm7, %v304_v4, %v305_v0  ;;  %v312_v11 = vadd.f32 %v304_v4, %v279_v38  ;;  %v336_v15 = vsel %vm333_vm8, %v334_v5, %v335_v1 }
  0xec   : > { %v313_v13 = vadd.f32 %v306_v10, %v280_v40 }
  0xed   : > { %v344_v14 = vadd.f32 %v338_v12, %v314_v9  ;;  %v342_v16 = vadd.f32 %v334_v5, %v312_v11 }
  0xee   : > { %v343_v17 = vadd.f32 %v336_v15, %v313_v13 }
  0xef   : > { %v354_v18 = vrot.slane %v344_v14, 2  ;;  %347 = vst [vmem:[%s1717_s13 + $0xd] sm:$0x7] %v344_v14  ;;  %345 = vst [vmem:[%s1717_s13 - $0x3] sm:$0xf8] %v342_v16  ;;  %v351_v19 = vrot.slane %v342_v16, 2 }
  0xf0   : > { %v352_v20 = vrot.slane %v343_v17, 2  ;;  %346 = vst [vmem:[%s1717_s13 + $0x5] sm:$0xff] %v343_v17 }
  0xf1   : > { %v361_v21 = vsel %vm1695_vm4, %v354_v18, 0.0 }
  0xf2   : > { %366 = vrot.lane.b32.xlu0 %v361_v21, %s1560_s6  ;;  %v355_v22 = vsel %vm285_vm5, %v352_v20, %v354_v18  ;;  %v353_v23 = vsel %vm285_vm5, %v351_v19, %v352_v20  ;;  %v379_v34 = vmul.f32 2.0, %v361_v21 }
  0xf3   : > { %v360_v24 = vsel %vm212_vm0, %v355_v22, 0.0  ;;  %v359_v25 = vsel %vm1689_vm2, %v353_v23, 0.0 }
  0xf4   : > { %364 = vrot.lane.b32.xlu1 %v360_v24, %s1560_s6  ;;  %v377_v28 = vmul.f32 2.0, %v359_v25  ;;  %v378_v31 = vmul.f32 2.0, %v360_v24 }
  0xf6   : > { %362 = vrot.lane.b32.xlu0 %v359_v25, %s1560_s6 }
  0xf8   : > { %368 = vrot.lane.b32.xlu1 %v359_v25, %s1561_s12 }
  0xfa   : > { %370 = vrot.lane.b32.xlu0 %v360_v24, %s1561_s12 }
  0xfc   : > { %372 = vrot.lane.b32.xlu1 %v361_v21, %s1561_s12 }
 0x164   : > { %v367_v26 = vpop.permute.xlu0 %366 }
 0x165   : > { %v382_v40 = vadd.f32 %v379_v34, %v367_v26 }
 0x166   : > { %v365_v27 = vpop.permute.xlu1 %364 }
 0x167   : > { %v381_v35 = vadd.f32 %v378_v31, %v365_v27 }
 0x168   : > { %v363_v29 = vpop.permute.xlu0 %362 }
 0x169   : > { %v380_v30 = vadd.f32 %v377_v28, %v363_v29 }
 0x16a   : > { %v369_v32 = vpop.permute.xlu1 %368 }
 0x16b   : > { %v374_v33 = vsub.f32 %v363_v29, %v369_v32  ;;  %v383_v36 = vadd.f32 %v380_v30, %v369_v32 }
 0x16c   : > { %v371_v37 = vpop.permute.xlu0 %370 }
 0x16d   : > { %v386_v38 = vmul.f32 2.0, %v374_v33  ;;  %v375_v39 = vsub.f32 %v365_v27, %v371_v37  ;;  %v384_v41 = vadd.f32 %v381_v35, %v371_v37  ;;  %v417_v45 = vrot.slane %v383_v36, 2 }
 0x16e   : > { %v373_v42 = vpop.permute.xlu1 %372  ;;  %v405_v52 = vrot.slane %v374_v33, 2 }
 0x16f   : > { %v387_v43 = vmul.f32 2.0, %v375_v39  ;;  %v376_v44 = vsub.f32 %v367_v26, %v373_v42  ;;  %v418_v46 = vrot.slane %v384_v41, 2  ;;  %v385_v47 = vadd.f32 %v382_v40, %v373_v42 }
 0x170   : > { %v393_v48 = vrot.slane %v386_v38, 1  ;;  %v406_v50 = vrot.slane %v375_v39, 2 }
 0x171   : > { %v394_v49 = vrot.slane %v387_v43, 1  ;;  %v388_v51 = vmul.f32 2.0, %v376_v44  ;;  %v419_v53 = vsel %vm285_vm5, %v417_v45, %v418_v46  ;;  %v420_v54 = vrot.slane %v385_v47, 2 }
 0x172   : > { %v1777_v55 = vsub.f32 %v383_v36, %v419_v53  ;;  %v408_v58 = vrot.slane %v376_v44, 2  ;;  %v407_v61 = vsel %vm285_vm5, %v405_v52, %v406_v50 }
 0x173   : > { %v395_v56 = vsel %vm392_vm9, %v393_v48, %v394_v49  ;;  %v396_v57 = vrot.slane %v388_v51, 1  ;;  %v421_v60 = vsel %vm285_vm5, %v418_v46, %v420_v54 }
 0x174   : > { %v400_v59 = vadd.f32 %v395_v56, %v374_v33  ;;  %v1783_v63 = vsub.f32 %v384_v41, %v421_v60  ;;  %v409_v3 = vsel %vm285_vm5, %v406_v50, %v408_v58  ;;  %v428_v4 = vmul.f32 %v1777_v55, %v1777_v55 }
 0x175   : > { %v397_v62 = vsel %vm392_vm9, %v394_v49, %v396_v57 }
 0x176   : > { %v401_v0 = vadd.f32 %v397_v62, %v375_v39  ;;  %v1785_v1 = vadd.f32 %v407_v61, %v400_v59  ;;  %v429_v10 = vmul.f32 %v1783_v63, %v1783_v63 }
 0x178   : > { %v1790_v5 = vadd.f32 %v409_v3, %v401_v0  ;;  %v426_v8 = vmul.f32 %v1785_v1, %v1785_v1 }
 0x17a   : > { %v427_v9 = vmul.f32 %v1790_v5, %v1790_v5  ;;  %v430_v11 = vadd.f32 %v428_v4, %v426_v8 }
 0x17c   : > { %v431_v12 = vadd.f32 %v429_v10, %v427_v9  ;;  %1309 = vrsqrt.f32 %v430_v11  ;;  %vm434_vm10 = vcmp.eq.f32.partialorder %v430_v11, inf  ;;  %v437_v16 = vand.u32 2147483648, %v430_v11 }
 0x17d   : > { %vm436_vm11 = vcmp.eq.f32.partialorder %v430_v11, 0.0 }
 0x17e   : > { %1311 = vrsqrt.f32 %v431_v12  ;;  %vm441_vm12 = vcmp.eq.f32.partialorder %v431_v12, inf  ;;  %v444_v20 = vand.u32 2147483648, %v431_v12  ;;  %vm443_vm13 = vcmp.eq.f32.partialorder %v431_v12, 0.0 }
 0x186   : > { %v1310_v13 = vpop.eup %1309 }
 0x187   : > { %v433_v14 = vmul.f32 %v1310_v13, %v430_v11 }
 0x188   : > { %v1312_v15 = vpop.eup %1311 }
 0x189   : > { %v435_v17 = vsel %vm434_vm10, %v430_v11, %v433_v14  ;;  %v440_v18 = vmul.f32 %v1312_v15, %v431_v12 }
 0x18a   : > { %v1798_v19 = vsel %vm436_vm11, %v437_v16, %v435_v17 }
 0x18b   : > { %v442_v21 = vsel %vm441_vm12, %v431_v12, %v440_v18 }
 0x18c   : > { %v1800_v22 = vsel %vm443_vm13, %v444_v20, %v442_v21 }
 0x18d   : > { %1525 = dma.done.wait [#allocation3 + $0x1], 352 }
 0x18e   : > { %1526 = vsyncadd [#allocation3 + $0x1], 4294966944  ;;  %v456_v23 = vld [vmem:[#allocation2 + $0x28] sm:$0x3f]  ;;  %v454_v24 = vld [vmem:[#allocation2 + $0x18] sm:$0xff] }
 0x18f   : > { %461 = vrot.lane.b32.xlu1 %v456_v23, %s1560_s6  ;;  %457 = vrot.lane.b32.xlu0 %v454_v24, %s1560_s6  ;;  %v455_v25 = vld [vmem:[#allocation2 + $0x20] sm:$0xff] }
 0x193   : > { %463 = vrot.lane.b32.xlu1 %v454_v24, %s1561_s12  ;;  %459 = vrot.lane.b32.xlu0 %v455_v25, %s1560_s6 }
 0x197   : > { %467 = vrot.lane.b32.xlu1 %v456_v23, %s1561_s12  ;;  %465 = vrot.lane.b32.xlu0 %v455_v25, %s1561_s12 }
 0x19b   : > { %471 = vrot.lane.b32.xlu1 %v455_v25, %s1562_s8  ;;  %469 = vrot.lane.b32.xlu0 %v454_v24, %s1562_s8 }
 0x19f   : > { %475 = vrot.lane.b32.xlu1 %v454_v24, %s1563_s22  ;;  %473 = vrot.lane.b32.xlu0 %v456_v23, %s1562_s8 }
 0x1a3   : > { %479 = vrot.lane.b32.xlu1 %v456_v23, %s1563_s22  ;;  %477 = vrot.lane.b32.xlu0 %v455_v25, %s1563_s22 }
 0x201   : > { %v462_v26 = vpop.permute.xlu1 %461  ;;  %v458_v27 = vpop.permute.xlu0 %457 }
 0x205   : > { %v464_v28 = vpop.permute.xlu1 %463  ;;  %v460_v29 = vpop.permute.xlu0 %459 }
 0x206   : > { %v481_v34 = vadd.f32 %v464_v28, %v458_v27 }
 0x208   : > { %v484_v40 = vmul.f32 0.60653067, %v481_v34 }
 0x209   : > { %v468_v30 = vpop.permute.xlu1 %467  ;;  %v466_v31 = vpop.permute.xlu0 %465 }
 0x20a   : > { %v483_v35 = vadd.f32 %v468_v30, %v462_v26  ;;  %v482_v36 = vadd.f32 %v466_v31, %v460_v29  ;;  %v487_v48 = vadd.f32 %v484_v40, %v454_v24 }
 0x20c   : > { %v486_v41 = vmul.f32 0.60653067, %v483_v35  ;;  %v485_v42 = vmul.f32 0.60653067, %v482_v36 }
 0x20d   : > { %v472_v32 = vpop.permute.xlu1 %471  ;;  %v470_v33 = vpop.permute.xlu0 %469 }
 0x20e   : > { %v489_v49 = vadd.f32 %v486_v41, %v456_v23  ;;  %v488_v50 = vadd.f32 %v485_v42, %v455_v25 }
 0x211   : > { %v476_v37 = vpop.permute.xlu1 %475  ;;  %v474_v38 = vpop.permute.xlu0 %473 }
 0x212   : > { %v490_v39 = vadd.f32 %v476_v37, %v470_v33 }
 0x214   : > { %v493_v43 = vmul.f32 0.13533528, %v490_v39 }
 0x215   : > { %v480_v44 = vpop.permute.xlu1 %479  ;;  %v478_v45 = vpop.permute.xlu0 %477 }
 0x216   : > { %v492_v46 = vadd.f32 %v480_v44, %v474_v38  ;;  %v491_v47 = vadd.f32 %v478_v45, %v472_v32  ;;  %v496_v53 = vadd.f32 %v493_v43, %v487_v48 }
 0x218   : > { %v495_v51 = vmul.f32 0.13533528, %v492_v46  ;;  %v494_v52 = vmul.f32 0.13533528, %v491_v47  ;;  %v502_v61 = vrot.slane %v496_v53, 2  ;;  %v530_v62 = vrot.slane %v496_v53, 4 }
 0x21a   : > { %v498_v54 = vadd.f32 %v495_v51, %v489_v49  ;;  %v497_v56 = vadd.f32 %v494_v52, %v488_v50 }
 0x21c   : > { %v503_v57 = vrot.slane %v497_v56, 2  ;;  %v505_v58 = vrot.slane %v498_v54, 2  ;;  %v531_v59 = vrot.slane %v497_v56, 4  ;;  %v533_v60 = vrot.slane %v498_v54, 4 }
 0x21e   : > { %v506_v0 = vsel %vm285_vm5, %v503_v57, %v505_v58  ;;  %v512_v3 = vadd.f32 %v505_v58, %v498_v54  ;;  %v534_v4 = vsel %vm315_vm6, %v531_v59, %v533_v60  ;;  %v540_v8 = vadd.f32 %v533_v60, %v498_v54 }
 0x21f   : > { %v511_v9 = vadd.f32 %v506_v0, %v497_v56  ;;  %v539_v10 = vadd.f32 %v534_v4, %v497_v56  ;;  %v504_v11 = vsel %vm285_vm5, %v502_v61, %v503_v57  ;;  %v532_v12 = vsel %vm315_vm6, %v530_v62, %v531_v59 }
 0x220   : > { %v515_v13 = vmul.f32 0.60653067, %v512_v3  ;;  %v543_v14 = vmul.f32 0.13533528, %v540_v8  ;;  %v510_v15 = vadd.f32 %v504_v11, %v496_v53  ;;  %v538_v16 = vadd.f32 %v532_v12, %v496_v53 }
 0x221   : > { %v514_v17 = vmul.f32 0.60653067, %v511_v9  ;;  %v542_v18 = vmul.f32 0.13533528, %v539_v10 }
 0x222   : > { %v522_v20 = vrot.slane %v515_v13, 7  ;;  %v513_v21 = vmul.f32 0.60653067, %v510_v15  ;;  %v541_v23 = vmul.f32 0.13533528, %v538_v16  ;;  %v550_v26 = vrot.slane %v543_v14, 6 }
 0x223   : > { %v520_v24 = vrot.slane %v514_v17, 7  ;;  %v548_v25 = vrot.slane %v542_v18, 6 }
 0x224   : > { %v519_v27 = vrot.slane %v513_v21, 7  ;;  %v547_v28 = vrot.slane %v541_v23, 6 }
 0x225   : > { %v523_v29 = vsel %vm303_vm7, %v520_v24, %v522_v20  ;;  %v551_v33 = vsel %vm333_vm8, %v548_v25, %v550_v26 }
 0x226   : > { %v529_v30 = vadd.f32 %v523_v29, %v498_v54  ;;  %v521_v31 = vsel %vm303_vm7, %v519_v27, %v520_v24  ;;  %v527_v32 = vadd.f32 %v519_v27, %v496_v53  ;;  %v549_v36 = vsel %vm333_vm8, %v547_v28, %v548_v25 }
 0x227   : > { %v528_v34 = vadd.f32 %v521_v31, %v497_v56 }
 0x228   : > { %v557_v35 = vadd.f32 %v551_v33, %v529_v30  ;;  %v555_v37 = vadd.f32 %v547_v28, %v527_v32 }
 0x229   : > { %v556_v38 = vadd.f32 %v549_v36, %v528_v34 }
 0x22a   : > { %v568_v39 = vrot.slane %v557_v35, 2  ;;  %1220 = vst [vmem:[%s1717_s13 + $0x1d] sm:$0x7] %v557_v35  ;;  %1218 = vst [vmem:[%s1717_s13 + $0xd] sm:$0xf8] %v555_v37  ;;  %v565_v40 = vrot.slane %v555_v37, 2 }
 0x22b   : > { %v566_v41 = vrot.slane %v556_v38, 2  ;;  %1219 = vst [vmem:[%s1717_s13 + $0x15] sm:$0xff] %v556_v38 }
 0x22c   : > { %v575_v42 = vsel %vm1695_vm4, %v568_v39, 0.0 }
 0x22d   : > { %580 = vrot.lane.b32.xlu0 %v575_v42, %s1560_s6  ;;  %v569_v43 = vsel %vm285_vm5, %v566_v41, %v568_v39  ;;  %v567_v44 = vsel %vm285_vm5, %v565_v40, %v566_v41  ;;  %v593_v56 = vmul.f32 2.0, %v575_v42 }
 0x22e   : > { %v574_v45 = vsel %vm212_vm0, %v569_v43, 0.0  ;;  %v573_v46 = vsel %vm1689_vm2, %v567_v44, 0.0 }
 0x22f   : > { %578 = vrot.lane.b32.xlu1 %v574_v45, %s1560_s6  ;;  %v591_v49 = vmul.f32 2.0, %v573_v46  ;;  %v592_v52 = vmul.f32 2.0, %v574_v45 }
 0x231   : > { %576 = vrot.lane.b32.xlu0 %v573_v46, %s1560_s6 }
 0x233   : > { %582 = vrot.lane.b32.xlu1 %v573_v46, %s1561_s12 }
 0x235   : > { %584 = vrot.lane.b32.xlu0 %v574_v45, %s1561_s12 }
 0x237   : > { %586 = vrot.lane.b32.xlu1 %v575_v42, %s1561_s12 }
 0x29f   : > { %v581_v47 = vpop.permute.xlu0 %580 }
 0x2a0   : > { %v596_v62 = vadd.f32 %v593_v56, %v581_v47 }
 0x2a1   : > { %v579_v48 = vpop.permute.xlu1 %578 }
 0x2a2   : > { %v595_v57 = vadd.f32 %v592_v52, %v579_v48 }
 0x2a3   : > { %v577_v50 = vpop.permute.xlu0 %576 }
 0x2a4   : > { %v594_v51 = vadd.f32 %v591_v49, %v577_v50 }
 0x2a5   : > { %v583_v53 = vpop.permute.xlu1 %582 }
 0x2a6   : > { %v588_v54 = vsub.f32 %v577_v50, %v583_v53  ;;  %v597_v58 = vadd.f32 %v594_v51, %v583_v53 }
 0x2a7   : > { %v585_v59 = vpop.permute.xlu0 %584 }
 0x2a8   : > { %v600_v60 = vmul.f32 2.0, %v588_v54  ;;  %v589_v61 = vsub.f32 %v579_v48, %v585_v59  ;;  %v598_v0 = vadd.f32 %v595_v57, %v585_v59  ;;  %v630_v9 = vrot.slane %v597_v58, 2 }
 0x2a9   : > { %v587_v3 = vpop.permute.xlu1 %586  ;;  %v618_v16 = vrot.slane %v588_v54, 2 }
 0x2aa   : > { %v601_v4 = vmul.f32 2.0, %v589_v61  ;;  %v590_v8 = vsub.f32 %v581_v47, %v587_v3  ;;  %v631_v10 = vrot.slane %v598_v0, 2  ;;  %v599_v11 = vadd.f32 %v596_v62, %v587_v3 }
 0x2ab   : > { %v606_v12 = vrot.slane %v600_v60, 1  ;;  %v619_v14 = vrot.slane %v589_v61, 2 }
 0x2ac   : > { %v607_v13 = vrot.slane %v601_v4, 1  ;;  %v602_v15 = vmul.f32 2.0, %v590_v8  ;;  %v632_v17 = vsel %vm285_vm5, %v630_v9, %v631_v10  ;;  %v633_v18 = vrot.slane %v599_v11, 2 }
 0x2ad   : > { %v637_v21 = vsub.f32 %v597_v58, %v632_v17  ;;  %v621_v24 = vrot.slane %v590_v8, 2  ;;  %v620_v27 = vsel %vm285_vm5, %v618_v16, %v619_v14 }
 0x2ae   : > { %v608_v20 = vsel %vm392_vm9, %v606_v12, %v607_v13  ;;  %v609_v23 = vrot.slane %v602_v15, 1  ;;  %v634_v26 = vsel %vm285_vm5, %v631_v10, %v633_v18 }
 0x2af   : > { %v613_v25 = vadd.f32 %v608_v20, %v588_v54  ;;  %v1844_v28 = vadd.f32 %v637_v21, %v1777_v55  ;;  %v638_v30 = vsub.f32 %v598_v0, %v634_v26  ;;  %v622_v33 = vsel %vm285_vm5, %v619_v14, %v621_v24 }
 0x2b0   : > { %v610_v29 = vsel %vm392_vm9, %v607_v13, %v609_v23  ;;  %v641_v36 = vmul.f32 %v637_v21, %v637_v21 }
 0x2b1   : > { %v625_v31 = vadd.f32 %v620_v27, %v613_v25  ;;  %v614_v32 = vadd.f32 %v610_v29, %v589_v61  ;;  %v1849_v34 = vadd.f32 %v638_v30, %v1783_v63  ;;  %v642_v41 = vmul.f32 %v638_v30, %v638_v30 }
 0x2b3   : > { %v639_v35 = vmul.f32 %v625_v31, %v625_v31  ;;  %v1852_v37 = vadd.f32 %v625_v31, %v1785_v1  ;;  %v626_v38 = vadd.f32 %v622_v33, %v614_v32 }
 0x2b5   : > { %v643_v39 = vadd.f32 %v641_v36, %v639_v35  ;;  %v640_v40 = vmul.f32 %v626_v38, %v626_v38  ;;  %v1855_v55 = vadd.f32 %v626_v38, %v1790_v5 }
 0x2b7   : > { %1313 = vrsqrt.f32 %v643_v39  ;;  %v644_v42 = vadd.f32 %v642_v41, %v640_v40  ;;  %vm647_vm14 = vcmp.eq.f32.partialorder %v643_v39, inf  ;;  %v650_v63 = vand.u32 2147483648, %v643_v39 }
 0x2b8   : > { %vm649_vm15 = vcmp.eq.f32.partialorder %v643_v39, 0.0 }
 0x2b9   : > { %1315 = vrsqrt.f32 %v644_v42  ;;  %vm654_vm1 = vcmp.eq.f32.partialorder %v644_v42, inf  ;;  %v657_v49 = vand.u32 2147483648, %v644_v42  ;;  %vm656_vm3 = vcmp.eq.f32.partialorder %v644_v42, 0.0 }
 0x2c1   : > { %v1314_v43 = vpop.eup %1313 }
 0x2c2   : > { %v646_v44 = vmul.f32 %v1314_v43, %v643_v39 }
 0x2c3   : > { %v1316_v45 = vpop.eup %1315 }
 0x2c4   : > { %v648_v46 = vsel %vm647_vm14, %v643_v39, %v646_v44  ;;  %v653_v1 = vmul.f32 %v1316_v45, %v644_v42 }
 0x2c5   : > { %v651_v47 = vsel %vm649_vm15, %v650_v63, %v648_v46 }
 0x2c6   : > { %v1858_v48 = vadd.f32 %v651_v47, %v1798_v19  ;;  %v655_v5 = vsel %vm654_vm1, %v644_v42, %v653_v1 }
 0x2c7   : > { %v658_v50 = vsel %vm656_vm3, %v657_v49, %v655_v5 }
 0x2c8   : > { %v1861_v51 = vadd.f32 %v658_v50, %v1800_v22 }
 0x2c9   : > { %1527 = dma.done.wait [#allocation3 + $0x2], 352 }
 0x2ca   : > { %1528 = vsyncadd [#allocation3 + $0x2], 4294966944  ;;  %v669_v52 = vld [vmem:[#allocation2 + $0x40] sm:$0x3f]  ;;  %v667_v53 = vld [vmem:[#allocation2 + $0x30] sm:$0xff]  ;;  %s1244_s5 = smul.u32 768, %s1551_s17 }
 0x2cb   : > { %674 = vrot.lane.b32.xlu1 %v669_v52, %s1560_s6  ;;  %670 = vrot.lane.b32.xlu0 %v667_v53, %s1560_s6  ;;  %v668_v54 = vld [vmem:[#allocation2 + $0x38] sm:$0xff]  ;;  %s966_s11 = sshll.u32 %s1717_s13, 4  ;;  %s936_s28 = scalar_lea.sflag [#allocation5], %s1641_s26  ;;  %s1907_s11 = int_to_ptr.vmem [resolvable:$true] %s966_s11 }
 0x2cc   : > { %s1905_s9 = scalar_lea.hbm %s2088_s1, %s1244_s5  ;;  %s1395_s30 = scalar_lea.vmem %s1907_s11, 768 }
 0x2cd   : > { %p1396_p9 = scmp.ne.s32.totalorder %s1907_s11, %s1395_s30  ;;  %s1564_s29 = smov [#allocation4]  }
 0x2cf   : > { %676 = vrot.lane.b32.xlu1 %v667_v53, %s1561_s12  ;;  %672 = vrot.lane.b32.xlu0 %v668_v54, %s1560_s6  ;;  %p1397_p10 = pnand %p1396_p9, %p1635_p7 }
 0x2d1   : > { %p1398_p11 = pneg %p1397_p10 }
 0x2d3   : > { %680 = vrot.lane.b32.xlu1 %v669_v52, %s1561_s12  ;;  %678 = vrot.lane.b32.xlu0 %v668_v54, %s1561_s12 }
 0x2d7   : > { %684 = vrot.lane.b32.xlu1 %v668_v54, %s1562_s8  ;;  %682 = vrot.lane.b32.xlu0 %v667_v53, %s1562_s8 }
 0x2db   : > { %688 = vrot.lane.b32.xlu1 %v667_v53, %s1563_s22  ;;  %686 = vrot.lane.b32.xlu0 %v669_v52, %s1562_s8 }
 0x2df   : > { %692 = vrot.lane.b32.xlu1 %v669_v52, %s1563_s22  ;;  %690 = vrot.lane.b32.xlu0 %v668_v54, %s1563_s22 }
 0x33d   : > { %v675_v19 = vpop.permute.xlu1 %674  ;;  %v671_v22 = vpop.permute.xlu0 %670 }
 0x341   : > { %v677_v56 = vpop.permute.xlu1 %676  ;;  %v673_v57 = vpop.permute.xlu0 %672 }
 0x342   : > { %v694_v62 = vadd.f32 %v677_v56, %v671_v22 }
 0x344   : > { %v697_v10 = vmul.f32 0.60653067, %v694_v62 }
 0x345   : > { %v681_v58 = vpop.permute.xlu1 %680  ;;  %v679_v59 = vpop.permute.xlu0 %678 }
 0x346   : > { %v696_v0 = vadd.f32 %v681_v58, %v675_v19  ;;  %v695_v3 = vadd.f32 %v679_v59, %v673_v57  ;;  %v700_v18 = vadd.f32 %v697_v10, %v667_v53 }
 0x348   : > { %v699_v11 = vmul.f32 0.60653067, %v696_v0  ;;  %v698_v12 = vmul.f32 0.60653067, %v695_v3 }
 0x349   : > { %v685_v60 = vpop.permute.xlu1 %684  ;;  %v683_v61 = vpop.permute.xlu0 %682 }
 0x34a   : > { %v702_v20 = vadd.f32 %v699_v11, %v669_v52  ;;  %v701_v21 = vadd.f32 %v698_v12, %v668_v54 }
 0x34d   : > { %v689_v4 = vpop.permute.xlu1 %688  ;;  %v687_v8 = vpop.permute.xlu0 %686 }
 0x34e   : > { %v703_v9 = vadd.f32 %v689_v4, %v683_v61 }
 0x350   : > { %v706_v13 = vmul.f32 0.13533528, %v703_v9 }
 0x351   : > { %v693_v14 = vpop.permute.xlu1 %692  ;;  %v691_v15 = vpop.permute.xlu0 %690 }
 0x352   : > { %v705_v16 = vadd.f32 %v693_v14, %v687_v8  ;;  %v704_v17 = vadd.f32 %v691_v15, %v685_v60  ;;  %v709_v25 = vadd.f32 %v706_v13, %v700_v18 }
 0x354   : > { %v708_v23 = vmul.f32 0.13533528, %v705_v16  ;;  %v707_v24 = vmul.f32 0.13533528, %v704_v17  ;;  %v715_v33 = vrot.slane %v709_v25, 2  ;;  %v743_v35 = vrot.slane %v709_v25, 4 }
 0x356   : > { %v711_v26 = vadd.f32 %v708_v23, %v702_v20  ;;  %v710_v27 = vadd.f32 %v707_v24, %v701_v21 }
 0x358   : > { %v716_v29 = vrot.slane %v710_v27, 2  ;;  %v718_v30 = vrot.slane %v711_v26, 2  ;;  %v744_v31 = vrot.slane %v710_v27, 4  ;;  %v746_v32 = vrot.slane %v711_v26, 4 }
 0x35a   : > { %v719_v36 = vsel %vm285_vm5, %v716_v29, %v718_v30  ;;  %v725_v38 = vadd.f32 %v718_v30, %v711_v26  ;;  %v747_v39 = vsel %vm315_vm6, %v744_v31, %v746_v32  ;;  %v753_v40 = vadd.f32 %v746_v32, %v711_v26 }
 0x35b   : > { %v724_v41 = vadd.f32 %v719_v36, %v710_v27  ;;  %v752_v42 = vadd.f32 %v747_v39, %v710_v27  ;;  %v717_v43 = vsel %vm285_vm5, %v715_v33, %v716_v29  ;;  %v745_v44 = vsel %vm315_vm6, %v743_v35, %v744_v31 }
 0x35c   : > { %v728_v63 = vmul.f32 0.60653067, %v725_v38  ;;  %v756_v45 = vmul.f32 0.13533528, %v753_v40  ;;  %v723_v46 = vadd.f32 %v717_v43, %v709_v25  ;;  %v751_v47 = vadd.f32 %v745_v44, %v709_v25 }
 0x35d   : > { %v727_v1 = vmul.f32 0.60653067, %v724_v41  ;;  %v755_v49 = vmul.f32 0.13533528, %v752_v42 }
 0x35e   : > { %v735_v5 = vrot.slane %v728_v63, 7  ;;  %v726_v50 = vmul.f32 0.60653067, %v723_v46  ;;  %v754_v52 = vmul.f32 0.13533528, %v751_v47  ;;  %v763_v19 = vrot.slane %v756_v45, 6 }
 0x35f   : > { %v733_v53 = vrot.slane %v727_v1, 7  ;;  %v761_v54 = vrot.slane %v755_v49, 6 }
 0x360   : > { %v732_v22 = vrot.slane %v726_v50, 7  ;;  %v760_v56 = vrot.slane %v754_v52, 6 }
 0x361   : > { %v736_v57 = vsel %vm303_vm7, %v733_v53, %v735_v5  ;;  %v764_v61 = vsel %vm333_vm8, %v761_v54, %v763_v19 }
 0x362   : > { %v742_v58 = vadd.f32 %v736_v57, %v711_v26  ;;  %v734_v59 = vsel %vm303_vm7, %v732_v22, %v733_v53  ;;  %v740_v60 = vadd.f32 %v732_v22, %v709_v25  ;;  %v762_v3 = vsel %vm333_vm8, %v760_v56, %v761_v54 }
 0x363   : > { %v741_v62 = vadd.f32 %v734_v59, %v710_v27 }
 0x364   : > { %v770_v0 = vadd.f32 %v764_v61, %v742_v58  ;;  %v768_v4 = vadd.f32 %v760_v56, %v740_v60 }
 0x365   : > { %v769_v8 = vadd.f32 %v762_v3, %v741_v62 }
 0x366   : > { %v781_v9 = vrot.slane %v770_v0, 2  ;;  %1223 = vst [vmem:[%s1717_s13 + $0x2d] sm:$0x7] %v770_v0  ;;  %1221 = vst [vmem:[%s1717_s13 + $0x1d] sm:$0xf8] %v768_v4  ;;  %v778_v10 = vrot.slane %v768_v4, 2 }
 0x367   : > { %v779_v11 = vrot.slane %v769_v8, 2  ;;  %1222 = vst [vmem:[%s1717_s13 + $0x25] sm:$0xff] %v769_v8 }
 0x368   : > { %v788_v12 = vsel %vm1695_vm4, %v781_v9, 0.0 }
 0x369   : > { %793 = vrot.lane.b32.xlu0 %v788_v12, %s1560_s6  ;;  %v782_v13 = vsel %vm285_vm5, %v779_v11, %v781_v9  ;;  %v780_v14 = vsel %vm285_vm5, %v778_v10, %v779_v11 }
 0x36a   : > { %v787_v15 = vsel %vm212_vm0, %v782_v13, 0.0  ;;  %v786_v16 = vsel %vm1689_vm2, %v780_v14, 0.0 }
 0x36b   : > { %791 = vrot.lane.b32.xlu1 %v787_v15, %s1560_s6 }
 0x36d   : > { %789 = vrot.lane.b32.xlu0 %v786_v16, %s1560_s6  ;;  %s1399_s6 = sshll.u32 %s1564_s29, 4  ;;  %s1400_s6 = int_to_ptr.vmem [resolvable:$false] %s1399_s6 }
 0x36e   : > { %s1401_s13 = scalar_lea.vmem %s1400_s6, 1536  ;;  %p1402_p12 = scmp.lt.s32.totalorder %s1907_s11, %s1400_s6 }
 0x36f   : > { %795 = vrot.lane.b32.xlu1 %v786_v16, %s1561_s12  ;;  %p1403_p13 = scmp.lt.s32.totalorder %s1401_s13, %s1395_s30 }
 0x371   : > { %797 = vrot.lane.b32.xlu0 %v787_v15, %s1561_s12  ;;  %p1404_p0 = por %p1403_p13, %p1402_p12 }
 0x373   : > { %799 = vrot.lane.b32.xlu1 %v788_v12, %s1561_s12  ;;  %p1405_p1 = pnand %p1404_p0, %p1398_p11 }
 0x375   : > { %1408 = shalt.err (!%p1405_p1)
}
 0x376   : > { %s1409_s12 = scalar_lea.hbm %s1905_s9, 768  ;;  %s1413_s5 = scalar_lea.hbm %s2088_s1, 1536 }
 0x377   : > { %p1410_p2 = scmp.ne.s32.totalorder %s1905_s9, %s1409_s12  ;;  %p1414_p5 = scmp.lt.u32.totalorder %s1905_s9, %s2088_s1 }
 0x378   : > { %p1415_p8 = scmp.lt.u32.totalorder %s1413_s5, %s1409_s12  ;;  %p1417_p10 = scmp.lt.u32.totalorder %s1409_s12, %s1905_s9 }
 0x379   : > { %p1411_p3 = pnand %p1410_p2, %p1635_p7 }
 0x37a   : > { %p1416_p9 = por %p1415_p8, %p1414_p5 }
 0x37b   : > { %p1412_p4 = pneg %p1411_p3 }
 0x37c   : > { %p1418_p11 = por %p1417_p10, %p1416_p9 }
 0x37e   : > { %p1419_p12 = pnand %p1418_p11, %p1412_p4 }
 0x380   : > { %1422 = shalt.err (!%p1419_p12)
}
 0x381   : > { %s1565_s30 = smov 128   ;;  %s1566_s29 = smov 8   ;;  %v804_v20 = vmul.f32 2.0, %v786_v16  ;;  %v805_v24 = vmul.f32 2.0, %v787_v15  ;;  %v806_v27 = vmul.f32 2.0, %v788_v12 }
 0x382   : > { %1245 = dma.vmem_to_hbm [thread:$0]  (%p1635_p7), %s1907_s11, 768, %s1905_s9, %s936_s28, %s1565_s30, %s1565_s30, %s1566_s29  }
 0x383   : > { %s940_s11 = sand.u32 1, %s1555_s18   ;;  %s1240_s9 = sshll.u32 %s1551_s17, 8 }
 0x384   : > { %s984_s28 = sshll.u32 %s1720_s14, 4  ;;  %s1002_s6 = sshll.u32 %s1723_s21, 4  ;;  %s1966_s28 = int_to_ptr.vmem [resolvable:$true] %s984_s28  ;;  %s1977_s6 = int_to_ptr.vmem [resolvable:$true] %s1002_s6 }
 0x385   : > { %s1960_s8 = scalar_lea.hbm %s2089_s2, %s1240_s9  ;;  %s1020_s22 = sshll.u32 %s1726_s27, 4  ;;  %s1985_s22 = int_to_ptr.vmem [resolvable:$true] %s1020_s22 }
 0x386   : > { %s1983_s13 = scalar_lea.hbm %s2091_s4, %s1240_s9  ;;  %s1987_s12 = scalar_lea.sflag [#allocation7], %s940_s11 }
 0x387   : > { %s1423_s17 = scalar_lea.vmem %s1966_s28, 256  ;;  %s1568_s5 = smov [#allocation6]  }
 0x388   : > { %p1424_p13 = scmp.ne.s32.totalorder %s1966_s28, %s1423_s17  ;;  %s1427_s20 = sshll.u32 %s1568_s5, 4  ;;  %s1428_s20 = int_to_ptr.vmem [resolvable:$false] %s1427_s20 }
 0x389   : > { %p1430_p2 = scmp.lt.s32.totalorder %s1966_s28, %s1428_s20 }
 0x38a   : > { %p1425_p0 = pnand %p1424_p13, %p1635_p7 }
 0x38c   : > { %p1426_p1 = pneg %p1425_p0 }
 0x3db   : > { %v794_v17 = vpop.permute.xlu0 %793 }
 0x3dc   : > { %v809_v35 = vadd.f32 %v806_v27, %v794_v17 }
 0x3dd   : > { %v792_v18 = vpop.permute.xlu1 %791 }
 0x3de   : > { %v808_v29 = vadd.f32 %v805_v24, %v792_v18 }
 0x3df   : > { %v790_v21 = vpop.permute.xlu0 %789 }
 0x3e0   : > { %v807_v23 = vadd.f32 %v804_v20, %v790_v21 }
 0x3e1   : > { %v796_v25 = vpop.permute.xlu1 %795 }
 0x3e2   : > { %v801_v26 = vsub.f32 %v790_v21, %v796_v25  ;;  %v810_v30 = vadd.f32 %v807_v23, %v796_v25 }
 0x3e3   : > { %v798_v31 = vpop.permute.xlu0 %797 }
 0x3e4   : > { %v813_v32 = vmul.f32 2.0, %v801_v26  ;;  %v802_v33 = vsub.f32 %v792_v18, %v798_v31  ;;  %v811_v36 = vadd.f32 %v808_v29, %v798_v31  ;;  %v843_v41 = vrot.slane %v810_v30, 2 }
 0x3e5   : > { %v800_v38 = vpop.permute.xlu1 %799  ;;  %v831_v47 = vrot.slane %v801_v26, 2 }
 0x3e6   : > { %v814_v39 = vmul.f32 2.0, %v802_v33  ;;  %v803_v40 = vsub.f32 %v794_v17, %v800_v38  ;;  %v844_v42 = vrot.slane %v811_v36, 2  ;;  %v812_v43 = vadd.f32 %v809_v35, %v800_v38 }
 0x3e7   : > { %v819_v44 = vrot.slane %v813_v32, 1  ;;  %v832_v45 = vrot.slane %v802_v33, 2 }
 0x3e8   : > { %v820_v63 = vrot.slane %v814_v39, 1  ;;  %v815_v46 = vmul.f32 2.0, %v803_v40  ;;  %v845_v1 = vsel %vm285_vm5, %v843_v41, %v844_v42  ;;  %v846_v49 = vrot.slane %v812_v43, 2 }
 0x3e9   : > { %v850_v50 = vsub.f32 %v810_v30, %v845_v1  ;;  %v834_v53 = vrot.slane %v803_v40, 2  ;;  %v833_v22 = vsel %vm285_vm5, %v831_v47, %v832_v45 }
 0x3ea   : > { %v821_v5 = vsel %vm392_vm9, %v819_v44, %v820_v63  ;;  %v822_v52 = vrot.slane %v815_v46, 1  ;;  %v847_v19 = vsel %vm285_vm5, %v844_v42, %v846_v49 }
 0x3eb   : > { %v826_v54 = vadd.f32 %v821_v5, %v801_v26  ;;  %v851_v57 = vsub.f32 %v811_v36, %v847_v19  ;;  %v854_v60 = vmul.f32 %v850_v50, %v850_v50  ;;  %v835_v61 = vsel %vm285_vm5, %v832_v45, %v834_v53 }
 0x3ec   : > { %v823_v56 = vsel %vm392_vm9, %v820_v63, %v822_v52  ;;  %v876_v3 = vadd.f32 %v850_v50, %v1844_v28  ;;  %v1567_v28 = vmov 1.0  }
 0x3ed   : > { %v838_v58 = vadd.f32 %v833_v22, %v826_v54  ;;  %v827_v59 = vadd.f32 %v823_v56, %v802_v33  ;;  %v855_v11 = vmul.f32 %v851_v57, %v851_v57  ;;  %v877_v13 = vadd.f32 %v851_v57, %v1849_v34 }
 0x3ee   : > { %v880_v14 = vand.u32 2147483647, %v876_v3  ;;  %vm900_vm11 = vcmp.ge.f32.partialorder %v876_v3, 0.0 }
 0x3ef   : > { %v852_v62 = vmul.f32 %v838_v58, %v838_v58  ;;  %v874_v0 = vadd.f32 %v838_v58, %v1852_v37  ;;  %v839_v4 = vadd.f32 %v835_v61, %v827_v59  ;;  %v881_v37 = vand.u32 2147483647, %v877_v13 }
 0x3f0   : > { %vm901_vm14 = vcmp.ge.f32.partialorder %v877_v13, 0.0 }
 0x3f1   : > { %v856_v8 = vadd.f32 %v854_v60, %v852_v62  ;;  %v878_v9 = vand.u32 2147483647, %v874_v0  ;;  %v853_v10 = vmul.f32 %v839_v4, %v839_v4  ;;  %v875_v12 = vadd.f32 %v839_v4, %v1855_v55 }
 0x3f2   : > { %vm894_vm10 = vcmp.ge.f32.partialorder %v874_v0, 0.0 }
 0x3f3   : > { %1317 = vrsqrt.f32 %v856_v8  ;;  %v882_v15 = vmul.f32 2.4142137, %v878_v9  ;;  %v886_v16 = vmul.f32 0.41421357, %v878_v9  ;;  %v857_v17 = vadd.f32 %v855_v11, %v853_v10 }
 0x3f4   : > { %v879_v18 = vand.u32 2147483647, %v875_v12  ;;  %vm895_vm12 = vcmp.ge.f32.partialorder %v875_v12, 0.0  ;;  %vm860_vm13 = vcmp.eq.f32.partialorder %v856_v8, inf  ;;  %v863_v35 = vand.u32 2147483648, %v856_v8 }
 0x3f5   : > { %vm884_vm5 = vcmp.gt.f32.partialorder %v880_v14, %v882_v15  ;;  %vm888_vm6 = vcmp.le.f32.partialorder %v880_v14, %v886_v16  ;;  %1319 = vrsqrt.f32 %v857_v17  ;;  %vm862_vm15 = vcmp.eq.f32.partialorder %v856_v8, 0.0 }
 0x3f6   : > { %v890_v20 = vsel %vm888_vm6, 0.0, %v1567_v28  ;;  %v883_v21 = vmul.f32 2.4142137, %v879_v18  ;;  %v887_v23 = vmul.f32 0.41421357, %v879_v18  ;;  %vm867_vm1 = vcmp.eq.f32.partialorder %v857_v17, inf }
 0x3f7   : > { %v892_v24 = vsel %vm884_vm5, 2.0, %v890_v20  ;;  %v870_v63 = vand.u32 2147483648, %v857_v17  ;;  %vm869_vm3 = vcmp.eq.f32.partialorder %v857_v17, 0.0 }
 0x3f8   : > { %v896_v25 = vsub.f32 4.0, %v892_v24  ;;  %vm885_vm8 = vcmp.gt.f32.partialorder %v881_v37, %v883_v21  ;;  %vm889_vm9 = vcmp.le.f32.partialorder %v881_v37, %v887_v23 }
 0x3f9   : > { %v891_v34 = vsel %vm889_vm9, 0.0, %v1567_v28 }
 0x3fa   : > { %v898_v55 = vsel %vm894_vm10, %v892_v24, %v896_v25  ;;  %v893_v26 = vsel %vm885_vm8, 2.0, %v891_v34 }
 0x3fb   : > { %v902_v27 = vsub.f32 0.0, %v898_v55  ;;  %v897_v29 = vsub.f32 4.0, %v893_v26 }
 0x3fd   : > { %v1318_v30 = vpop.eup %1317  ;;  %v904_v32 = vsel %vm900_vm11, %v898_v55, %v902_v27  ;;  %v899_v33 = vsel %vm895_vm12, %v893_v26, %v897_v29 }
 0x3fe   : > { %v859_v31 = vmul.f32 %v1318_v30, %v856_v8  ;;  %v906_v36 = vadd.f32 4.0, %v904_v32  ;;  %v903_v38 = vsub.f32 0.0, %v899_v33 }
 0x3ff   : > { %v1320_v39 = vpop.eup %1319 }
 0x400   : > { %v861_v40 = vsel %vm860_vm13, %v856_v8, %v859_v31  ;;  %v922_v41 = vmul.f32 45.0, %v906_v36  ;;  %v866_v42 = vmul.f32 %v1320_v39, %v857_v17  ;;  %v905_v43 = vsel %vm901_vm14, %v899_v33, %v903_v38 }
 0x401   : > { %v864_v44 = vsel %vm862_vm15, %v863_v35, %v861_v40  ;;  %v907_v45 = vadd.f32 4.0, %v905_v43 }
 0x402   : > { %v872_v46 = vadd.f32 %v864_v44, %v1858_v48  ;;  %924 = vst [vmem:[%s1723_s21] sm:$0xff] %v922_v41  ;;  %v868_v47 = vsel %vm867_vm1, %v857_v17, %v866_v42 }
 0x403   : > { %v923_v1 = vmul.f32 45.0, %v907_v45  ;;  %v871_v49 = vsel %vm869_vm3, %v870_v63, %v868_v47 }
 0x404   : > { %v910_v5 = vrot.slane %v872_v46, 7  ;;  %v873_v50 = vadd.f32 %v871_v49, %v1861_v51 }
 0x405   : > { %925 = vst [vmem:[%s1723_s21 + $0x8] sm:$0xff] %v923_v1  ;;  %s1971_s21 = scalar_lea.hbm %s2090_s3, %s1240_s9 }
 0x406   : > { %v916_v52 = vsel %vm1689_vm2, %v910_v5, 0.0  ;;  %v911_v53 = vrot.slane %v873_v50, 7 }
 0x407   : > { %919 = vst [vmem:[%s1720_s14 - $0x1] sm:$0xfe] %v916_v52  ;;  %vm926_vm5 = vcmp.lt.f32.partialorder %v916_v52, 10.0 }
 0x408   : > { %v929_v48 = vsel %vm926_vm5, 0.0, %v916_v52  ;;  %v912_v51 = vsel %vm303_vm7, %v910_v5, %v911_v53  ;;  %v918_v6 = vsel %vm1695_vm4, %v911_v53, 0.0 }
 0x409   : > { %932 = vst [vmem:[%s1726_s27 - $0x1] sm:$0xfe] %v929_v48  ;;  %v917_v54 = vsel %vm212_vm0, %v912_v51, 0.0  ;;  %921 = vst [vmem:[%s1720_s14 + $0xf] sm:$0x1] %v918_v6  ;;  %vm928_vm2 = vcmp.lt.f32.partialorder %v918_v6, 10.0 }
 0x40a   : > { %920 = vst [vmem:[%s1720_s14 + $0x7] sm:$0xff] %v917_v54  ;;  %vm927_vm4 = vcmp.lt.f32.partialorder %v917_v54, 10.0  ;;  %v931_v7 = vsel %vm928_vm2, 0.0, %v918_v6  ;;  %s1429_s14 = scalar_lea.vmem %s1428_s20, 512 }
 0x40b   : > { %p1431_p3 = scmp.lt.s32.totalorder %s1429_s14, %s1423_s17 }
 0x40d   : > { %p1432_p4 = por %p1431_p3, %p1430_p2 }
 0x40f   : > { %p1433_p5 = pnand %p1432_p4, %p1426_p1 }
 0x411   : > { %1436 = shalt.err (!%p1433_p5)
}
 0x412   : > { %s1437_s11 = scalar_lea.hbm %s1960_s8, 256  ;;  %s1441_s10 = scalar_lea.hbm %s2089_s2, 512 }
 0x413   : > { %p1438_p8 = scmp.ne.s32.totalorder %s1960_s8, %s1437_s11  ;;  %p1442_p11 = scmp.lt.u32.totalorder %s1960_s8, %s2089_s2 }
 0x414   : > { %p1443_p12 = scmp.lt.u32.totalorder %s1441_s10, %s1437_s11  ;;  %p1445_p0 = scmp.lt.u32.totalorder %s1437_s11, %s1960_s8 }
 0x415   : > { %p1439_p9 = pnand %p1438_p8, %p1635_p7 }
 0x416   : > { %p1444_p13 = por %p1443_p12, %p1442_p11 }
 0x417   : > { %p1440_p10 = pneg %p1439_p9 }
 0x418   : > { %p1446_p1 = por %p1445_p0, %p1444_p13 }
 0x41a   : > { %p1447_p2 = pnand %p1446_p1, %p1440_p10 }
 0x41c   : > { %1450 = shalt.err (!%p1447_p2)
}
 0x41d   : > { %1246 = dma.vmem_to_hbm [thread:$0]  (%p1635_p7), %s1966_s28, 256, %s1960_s8, %s1987_s12, %s1565_s30, %s1565_s30, %s1566_s29   ;;  %v930_v2 = vsel %vm927_vm4, 0.0, %v917_v54 }
 0x41e   : > { %934 = vst [vmem:[%s1726_s27 + $0xf] sm:$0x1] %v931_v7  ;;  %s1451_s17 = scalar_lea.vmem %s1977_s6, 256  ;;  %s1569_s14 = smov [#allocation8]  }
 0x41f   : > { %p1452_p3 = scmp.ne.s32.totalorder %s1977_s6, %s1451_s17  ;;  %s1455_s11 = sshll.u32 %s1569_s14, 4  ;;  %s1456_s11 = int_to_ptr.vmem [resolvable:$false] %s1455_s11 }
 0x420   : > { %s1457_s9 = scalar_lea.vmem %s1456_s11, 512  ;;  %p1458_p8 = scmp.lt.s32.totalorder %s1977_s6, %s1456_s11 }
 0x421   : > { %p1453_p4 = pnand %p1452_p3, %p1635_p7  ;;  %p1459_p9 = scmp.lt.s32.totalorder %s1457_s9, %s1451_s17 }
 0x423   : > { %p1454_p5 = pneg %p1453_p4  ;;  %p1460_p10 = por %p1459_p9, %p1458_p8 }
 0x425   : > { %p1461_p11 = pnand %p1460_p10, %p1454_p5 }
 0x427   : > { %1464 = shalt.err (!%p1461_p11)
}
 0x428   : > { %s1465_s28 = scalar_lea.hbm %s1971_s21, 256  ;;  %s1469_s10 = scalar_lea.hbm %s2090_s3, 512 }
 0x429   : > { %p1466_p12 = scmp.ne.s32.totalorder %s1971_s21, %s1465_s28  ;;  %p1470_p1 = scmp.lt.u32.totalorder %s1971_s21, %s2090_s3 }
 0x42a   : > { %p1471_p2 = scmp.lt.u32.totalorder %s1469_s10, %s1465_s28  ;;  %p1473_p4 = scmp.lt.u32.totalorder %s1465_s28, %s1971_s21 }
 0x42b   : > { %p1467_p13 = pnand %p1466_p12, %p1635_p7 }
 0x42c   : > { %p1472_p3 = por %p1471_p2, %p1470_p1 }
 0x42d   : > { %p1468_p0 = pneg %p1467_p13 }
 0x42e   : > { %p1474_p5 = por %p1473_p4, %p1472_p3 }
 0x430   : > { %p1475_p8 = pnand %p1474_p5, %p1468_p0 }
 0x432   : > { %1478 = shalt.err (!%p1475_p8)
}
 0x433   : > { %1247 = dma.vmem_to_hbm [thread:$0]  (%p1635_p7), %s1977_s6, 256, %s1971_s21, %s1987_s12, %s1565_s30, %s1565_s30, %s1566_s29  }
 0x434   : > { %933 = vst [vmem:[%s1726_s27 + $0x7] sm:$0xff] %v930_v2  ;;  %s951_s17 = scalar_lea.sflag [#allocation10], %s1641_s26  ;;  %s1479_s14 = scalar_lea.vmem %s1985_s22, 256 }
 0x435   : > { %p1480_p9 = scmp.ne.s32.totalorder %s1985_s22, %s1479_s14  ;;  %s1570_s11 = smov [#allocation9]  }
 0x436   : > { %s1483_s9 = sshll.u32 %s1570_s11, 4  ;;  %s1484_s9 = int_to_ptr.vmem [resolvable:$false] %s1483_s9 }
 0x437   : > { %p1481_p10 = pnand %p1480_p9, %p1635_p7  ;;  %s1485_s28 = scalar_lea.vmem %s1484_s9, 512 }
 0x438   : > { %p1486_p12 = scmp.lt.s32.totalorder %s1985_s22, %s1484_s9  ;;  %p1487_p13 = scmp.lt.s32.totalorder %s1485_s28, %s1479_s14 }
 0x439   : > { %p1482_p11 = pneg %p1481_p10 }
 0x43a   : > { %p1488_p0 = por %p1487_p13, %p1486_p12 }
 0x43c   : > { %p1489_p1 = pnand %p1488_p0, %p1482_p11 }
 0x43e   : > { %1492 = shalt.err (!%p1489_p1)
}
 0x43f   : > { %s1493_s27 = scalar_lea.hbm %s1983_s13, 256  ;;  %s1497_s12 = scalar_lea.hbm %s2091_s4, 512 }
 0x440   : > { %p1494_p2 = scmp.ne.s32.totalorder %s1983_s13, %s1493_s27  ;;  %p1498_p5 = scmp.lt.u32.totalorder %s1983_s13, %s2091_s4 }
 0x441   : > { %p1499_p8 = scmp.lt.u32.totalorder %s1497_s12, %s1493_s27  ;;  %p1501_p10 = scmp.lt.u32.totalorder %s1493_s27, %s1983_s13 }
 0x442   : > { %p1495_p3 = pnand %p1494_p2, %p1635_p7 }
 0x443   : > { %p1500_p9 = por %p1499_p8, %p1498_p5 }
 0x444   : > { %p1496_p4 = pneg %p1495_p3 }
 0x445   : > { %p1502_p11 = por %p1501_p10, %p1500_p9 }
 0x447   : > { %p1503_p12 = pnand %p1502_p11, %p1496_p4 }
 0x449   : > { %1506 = shalt.err (!%p1503_p12)
}
 0x44a   : > { %1248 = dma.vmem_to_hbm [thread:$0]  (%p1635_p7), %s1985_s22, 256, %s1983_s13, %s951_s17, %s1565_s30, %s1565_s30, %s1566_s29  }
 0x44b PF: > { %p1266_p13 = scmp.ge.s32.totalorder %s1555_s18, 1  ;;  %s1035_s10 = sand.u32 1, %s1543_s15  }
 0x44c   : > { %s1036_s5 = scalar_lea.sflag [#allocation5], %s1035_s10 }
 0x44d   : > { %p1254_p0 = pnand %p1266_p13, %p1628_p6 }
 0x44f   : > { %1530 = dma.done.wait (!%p1254_p0), %s1036_s5, 768  }
 0x450   : > { %1532 = vsyncadd (!%p1254_p0), %s1036_s5, 4294966528  ;;  %s2099_s25 = sadd.s32 4294967295, %s1555_s18  }
 0x451   : > { %s1044_s20 = sand.u32 1, %s2099_s25  }
 0x452   : > { %s1045_s14 = scalar_lea.sflag [#allocation7], %s1044_s20 }
 0x453   : > { %1534 = dma.done.wait (!%p1254_p0), %s1045_s14, 512  }
 0x454   : > { %1536 = vsyncadd (!%p1254_p0), %s1045_s14, 4294966784  ;;  %s1063_s26 = scalar_lea.sflag [#allocation10], %s1035_s10 }
 0x455   : > { %1538 = dma.done.wait (!%p1254_p0), %s1063_s26, 256  }
 0x456   : > { %1540 = vsyncadd (!%p1254_p0), %s1063_s26, 4294967040  ;;  %s24_s18 = sadd.s32 1, %s1555_s18   ;;  %s2100_s15 = smov %s1547_s16 }
 0x457   : > { %p21_p7 = scmp.ge.s32.totalorder %s24_s18, 3   ;;  %s2101_s16 = smov %s1633_s24 }
 0x458   : > { %s2102_s17 = smov %s2104_s19 }
 0x459   :  { %23 = sbr.rel (!%p21_p7) target bundleno = 7 (0x7), region = 116 }
 0x460   :  { %1068 = vsyncpa [#allocation5], 1 }
 0x461   :  { %1070 = vsyncpa [#allocation5 + $0x1], 1 }
 0x462   :  { %1071 = vsyncpa [#allocation7], 1 }
 0x463   :  { %1073 = vsyncpa [#allocation7 + $0x1], 1 }
 0x464   :  { %1074 = vsyncpa [#allocation10], 1 }
 0x465   :  { %1076 = vsyncpa [#allocation10 + $0x1], 1 }
 0x466   :  { %1077 = vsyncmov [#allocation3] }
 0x469   :  { %s1078_s23 = vpop.sfrf %1077 }
 0x46a   :  { %p1236_p6 = scmp.ne.s32.totalorder %s1078_s23, 0 }
 0x46c   :  { %1082 = shalt.err (%p1236_p6)  }
 0x46d   :  { %1084 = vsyncmov [#allocation3 + $0x1] }
 0x470   :  { %s1085_s30 = vpop.sfrf %1084 }
 0x471   :  { %p1237_p1 = scmp.ne.s32.totalorder %s1085_s30, 0 }
 0x473   :  { %1089 = shalt.err (%p1237_p1)  }
 0x474   :  { %1091 = vsyncmov [#allocation3 + $0x2] }
 0x477   :  { %s1092_s24 = vpop.sfrf %1091 }
 0x478   :  { %p1238_p2 = scmp.ne.s32.totalorder %s1092_s24, 0 }
 0x47a   :  { %1096 = shalt.err (%p1238_p2)  }

</bundles_post_ra>
